<compile_context>
chip_gen: v7x
topology: tpu7x:2x2x1
jax: 0.10.0
libtpu: 0.0.40
codegen_flags: <defaults>
</compile_context>

<pallas_src>
import functools

import jax
import jax.numpy as jnp
from jax.experimental import pallas as pl
from jax.experimental.pallas import tpu as pltpu

NUM_LABELS = 8  # stand-in for len(LABELS_NAMES)
LN_EPS = 1e-5


def _round_up(n, m):
    return ((n + m - 1) // m) * m


def _device_kind():
    try:
        return jax.devices()[0].device_kind.lower()
    except Exception:
        return ""


def _fasttext_kernel(x_ref, gamma_ref, beta_ref, mask_ref,
                     w11_ref, b11_ref, w12_ref, b12_ref,
                     w21_ref, b21_ref, w22_ref, b22_ref,
                     w31_ref, b31_ref, w32_ref, b32_ref,
                     wc_ref, bc_ref,
                     out_ref, *, d_real, compute_dtype):
    # x tile: (TB, d_pad) f32; pad lanes are zero (wrapper zero-pads).
    x = x_ref[...]
    inv_d = jnp.float32(1.0 / d_real)

    # ---- LayerNorm (f32), biased variance over the real feature lanes only ----
    mean = jnp.sum(x, axis=-1, keepdims=True) * inv_d      # pad lanes contribute 0
    centered = x - mean
    cm = centered * mask_ref[...]                           # mask pad lanes for variance
    var = jnp.sum(cm * cm, axis=-1, keepdims=True) * inv_d
    # gamma/beta are zero-padded, so pad lanes of xn are exactly 0 again.
    xn = centered * jax.lax.rsqrt(var + LN_EPS) * gamma_ref[...] + beta_ref[...]
    xn = xn.astype(compute_dtype)

    def residual_block(xin, w1_ref, b1_ref, w2_ref, b2_ref):
        h = jnp.dot(xin.astype(jnp.bfloat16), w1_ref[...],
                    preferred_element_type=jnp.float32)
        h = jnp.maximum(h.astype(compute_dtype) + b1_ref[...].astype(compute_dtype), 0)
        o = jnp.dot(h.astype(jnp.bfloat16), w2_ref[...],
                    preferred_element_type=jnp.float32)
        o = jnp.maximum(o.astype(compute_dtype) + b2_ref[...].astype(compute_dtype), 0)
        # Dropout1d(p): identity in eval mode.
        return o + xin

    x1 = residual_block(xn, w11_ref, b11_ref, w12_ref, b12_ref)
    x2 = residual_block(x1, w21_ref, b21_ref, w22_ref, b22_ref)
    x3 = residual_block(x2, w31_ref, b31_ref, w32_ref, b32_ref)

    # ---- Classifier: Linear -> Sigmoid (lane-dense 128-wide output slab) ----
    logits = jnp.dot(x3.astype(jnp.bfloat16), wc_ref[...],
                     preferred_element_type=jnp.float32) + bc_ref[...]
    out_ref[...] = jax.nn.sigmoid(logits).astype(out_ref.dtype)


def prepare_params(params, in_features):
    """Pad/transpose/cast weights ONCE (hoisted out of the per-call hot path)."""
    d = in_features
    d_pad = _round_up(d, 128)
    h_pad = _round_up(2 * d, 128)
    o_pad = _round_up(NUM_LABELS, 128)

    def pad2(a, rows, cols, dtype):
        a = jnp.asarray(a, jnp.float32)
        a = jnp.pad(a, ((0, rows - a.shape[0]), (0, cols - a.shape[1])))
        return a.astype(dtype)

    prep = {
        "d": d, "d_pad": d_pad, "h_pad": h_pad, "o_pad": o_pad,
        "gamma": pad2(params["gamma"], 1, d_pad, jnp.float32),
        "beta": pad2(params["beta"], 1, d_pad, jnp.float32),
        "mask": (jnp.arange(d_pad) < d).astype(jnp.float32).reshape(1, d_pad),
        "wc": pad2(params["wc"], d_pad, o_pad, jnp.bfloat16),
        "bc": pad2(params["bc"], 1, o_pad, jnp.float32),
    }
    for blk in ("1", "2", "3"):
        prep[f"w{blk}1"] = pad2(params[f"w{blk}1"], d_pad, h_pad, jnp.bfloat16)
        prep[f"b{blk}1"] = pad2(params[f"b{blk}1"], 1, h_pad, jnp.float32)
        prep[f"w{blk}2"] = pad2(params[f"w{blk}2"], h_pad, d_pad, jnp.bfloat16)
        prep[f"b{blk}2"] = pad2(params[f"b{blk}2"], 1, d_pad, jnp.float32)
    return jax.tree_util.tree_map(
        lambda a: jax.block_until_ready(a) if isinstance(a, jax.Array) else a, prep)


def complicated_fasttext_classifier(x, prep, *, block_batch=None,
                                    single_buffer_weights=True):
    B, d = x.shape
    assert d == prep["d"], "input feature dim does not match prepared params"
    d_pad, h_pad, o_pad = prep["d_pad"], prep["h_pad"], prep["o_pad"]

    kind = _device_kind()
    # bf16 elementwise only where the VPU has bf16 ALUs (v6e / v7x).
    compute_dtype = jnp.bfloat16 if ("v6" in kind or "v7" in kind) else jnp.float32
    phys_vmem = (64 << 20) if "v7" in kind else (128 << 20)
    if block_batch is None:
        block_batch = 512 if "v6" in kind else 256   # bigger tiles on v6e (128 MiB VMEM)

    # ---- batch tiling: >=2 grid steps for megacore, bounded padding waste ----
    b8 = _round_up(B, 8)
    tb = min(block_batch, b8)
    if b8 >= 16 and b8 // tb < 2:                 # give both v7x TCs work
        tb = _round_up((b8 + 1) // 2, 8)
    while tb > 8 and (_round_up(b8, tb) - b8) * 4 > b8:   # cap dead rows at ~25%
        tb = max(8, _round_up(tb // 2, 8))
    b_pad = _round_up(b8, tb)

    x_p = jnp.pad(x.astype(jnp.float32), ((0, b_pad - B), (0, d_pad - d)))

    args = (x_p, prep["gamma"], prep["beta"], prep["mask"],
            prep["w11"], prep["b11"], prep["w12"], prep["b12"],
            prep["w21"], prep["b21"], prep["w22"], prep["b22"],
            prep["w31"], prep["b31"], prep["w32"], prep["b32"],
            prep["wc"], prep["bc"])

    # Resident operands: constant index_map (DMA'd once) + single buffer.
    n_buf = 1 if single_buffer_weights else 2

    def resident(rows, cols):
        if single_buffer_weights:
            return pl.BlockSpec((rows, cols), lambda i: (0, 0),
                                pipeline_mode=pl.Buffered(1))
        return pl.BlockSpec((rows, cols), lambda i: (0, 0))

    in_specs = [
        pl.BlockSpec((tb, d_pad), lambda i: (i, 0)),       # x (streamed)
        resident(1, d_pad), resident(1, d_pad), resident(1, d_pad),  # gamma, beta, mask
        resident(d_pad, h_pad), resident(1, h_pad), resident(h_pad, d_pad), resident(1, d_pad),
        resident(d_pad, h_pad), resident(1, h_pad), resident(h_pad, d_pad), resident(1, d_pad),
        resident(d_pad, h_pad), resident(1, h_pad), resident(h_pad, d_pad), resident(1, d_pad),
        resident(d_pad, o_pad), resident(1, o_pad),        # classifier
    ]
    out_spec = pl.BlockSpec((tb, o_pad), lambda i: (i, 0))

    # ---- explicit VMEM budget: weights + streamed tiles + intermediate slack ----
    elem = 2 if compute_dtype == jnp.bfloat16 else 4
    weight_bytes = n_buf * (6 * d_pad * h_pad + d_pad * o_pad) * 2        # bf16 weights
    vec_bytes = n_buf * (3 * d_pad + 3 * (h_pad + d_pad) + o_pad) * 4     # f32 vectors
    stream_bytes = 2 * tb * d_pad * 4 + 2 * tb * o_pad * 2                # x (f32) + out (bf16)
    interm_bytes = 6 * tb * h_pad * max(elem, 4)                          # activation slabs
    vmem_limit = int(1.25 * (weight_bytes + vec_bytes + stream_bytes + interm_bytes))
    vmem_limit = min(max(vmem_limit, 16 << 20), int(0.9 * phys_vmem))

    kernel = functools.partial(_fasttext_kernel, d_real=d, compute_dtype=compute_dtype)
    y_pad = pl.pallas_call(
        kernel,
        out_shape=jax.ShapeDtypeStruct((b_pad, o_pad), jnp.bfloat16),
        grid=(b_pad // tb,),
        in_specs=in_specs,
        out_specs=out_spec,
        compiler_params=pltpu.CompilerParams(
            dimension_semantics=("parallel",),   # megacore sharding on v7x
            vmem_limit_bytes=vmem_limit,
        ),
    )(*args)
    return y_pad[:B, :NUM_LABELS].astype(jnp.float32)


def make_params(key, in_features):
    d = in_features
    h = 2 * in_features
    glorot = jax.nn.initializers.glorot_uniform()
    keys = jax.random.split(key, 7)
    # Linear weights stored as [in, out] (transposed vs PyTorch [out, in]).
    return {
        "gamma": jnp.ones((1, d), jnp.float32),
        "beta": jnp.zeros((1, d), jnp.float32),
        "w11": glorot(keys[0], (d, h), jnp.float32), "b11": jnp.zeros((1, h), jnp.float32),
        "w12": glorot(keys[1], (h, d), jnp.float32), "b12": jnp.zeros((1, d), jnp.float32),
        "w21": glorot(keys[2], (d, h), jnp.float32), "b21": jnp.zeros((1, h), jnp.float32),
        "w22": glorot(keys[3], (h, d), jnp.float32), "b22": jnp.zeros((1, d), jnp.float32),
        "w31": glorot(keys[4], (d, h), jnp.float32), "b31": jnp.zeros((1, h), jnp.float32),
        "w32": glorot(keys[5], (h, d), jnp.float32), "b32": jnp.zeros((1, d), jnp.float32),
        "wc": glorot(keys[6], (d, NUM_LABELS), jnp.float32),
        "bc": jnp.zeros((1, NUM_LABELS), jnp.float32),
    }


def reference_forward(x, p):
    """Pure-JAX f32 reference mirroring the PyTorch forward (eval mode)."""
    mean = jnp.mean(x, axis=-1, keepdims=True)
    var = jnp.mean((x - mean) ** 2, axis=-1, keepdims=True)
    xn = (x - mean) / jnp.sqrt(var + LN_EPS) * p["gamma"] + p["beta"]

    def blk(xin, w1, b1, w2, b2):
        hh = jax.nn.relu(xin @ w1 + b1)
        oo = jax.nn.relu(hh @ w2 + b2)
        return oo + xin

    x1 = blk(xn, p["w11"], p["b11"], p["w12"], p["b12"])
    x2 = blk(x1, p["w21"], p["b21"], p["w22"], p["b22"])
    x3 = blk(x2, p["w31"], p["b31"], p["w32"], p["b32"])
    return jax.nn.sigmoid(x3 @ p["wc"] + p["bc"])


if __name__ == "__main__":
    in_features = 32
    batch = 16   # splits into 2 batch tiles -> exercises the multi-step grid

    key = jax.random.PRNGKey(0)
    k_x, k_p = jax.random.split(key)
    x = jax.random.normal(k_x, (batch, in_features), jnp.float32)
    params = make_params(k_p, in_features)
    prep = prepare_params(params, in_features)   # padded/bf16 weights, built once

    try:
        y = complicated_fasttext_classifier(x, prep)
    except Exception:
        # Fallback if this JAX build rejects single-buffered resident inputs.
        y = complicated_fasttext_classifier(x, prep, single_buffer_weights=False)
    y = jax.block_until_ready(y)

    y_ref = reference_forward(x, params)
    assert y.shape == (batch, NUM_LABELS)
    # bf16 MXU operands + bf16 elementwise/output on v6e/v7x -> loose tolerance
    # vs the pure-f32 reference (post-sigmoid values are in [0, 1]).
    assert jnp.allclose(y, y_ref, atol=3e-2, rtol=3e-2), "mismatch vs reference"
    print("KERNEL_OK")
</pallas_src>

<mosaic_0001>
module attributes {stable_mosaic.version = 11 : i64} {
  func.func @_fasttext_kernel(%arg0: i32, %arg1: memref<8x128xf32, #tpu.memory_space<vmem>>, %arg2: memref<1x128xf32, #tpu.memory_space<vmem>>, %arg3: memref<1x128xf32, #tpu.memory_space<vmem>>, %arg4: memref<1x128xf32, #tpu.memory_space<vmem>>, %arg5: memref<128x128xbf16, #tpu.memory_space<vmem>>, %arg6: memref<1x128xf32, #tpu.memory_space<vmem>>, %arg7: memref<128x128xbf16, #tpu.memory_space<vmem>>, %arg8: memref<1x128xf32, #tpu.memory_space<vmem>>, %arg9: memref<128x128xbf16, #tpu.memory_space<vmem>>, %arg10: memref<1x128xf32, #tpu.memory_space<vmem>>, %arg11: memref<128x128xbf16, #tpu.memory_space<vmem>>, %arg12: memref<1x128xf32, #tpu.memory_space<vmem>>, %arg13: memref<128x128xbf16, #tpu.memory_space<vmem>>, %arg14: memref<1x128xf32, #tpu.memory_space<vmem>>, %arg15: memref<128x128xbf16, #tpu.memory_space<vmem>>, %arg16: memref<1x128xf32, #tpu.memory_space<vmem>>, %arg17: memref<128x128xbf16, #tpu.memory_space<vmem>>, %arg18: memref<1x128xf32, #tpu.memory_space<vmem>>, %arg19: memref<8x128xbf16, #tpu.memory_space<vmem>>) attributes {dimension_semantics = [#tpu.dimension_semantics<parallel>], iteration_bounds = array<i64: 2>, scalar_prefetch = 0 : i64, scratch_operands = 0 : i64, tpu.core_type = #tpu.core_type<tc>, window_params = [{transform_indices = @transform_0, window_bounds = array<i64: 8, 128>}, {pipeline_mode = #tpu.pipeline_mode<synchronous>, transform_indices = @transform_1, window_bounds = array<i64: 1, 128>}, {pipeline_mode = #tpu.pipeline_mode<synchronous>, transform_indices = @transform_2, window_bounds = array<i64: 1, 128>}, {pipeline_mode = #tpu.pipeline_mode<synchronous>, transform_indices = @transform_3, window_bounds = array<i64: 1, 128>}, {pipeline_mode = #tpu.pipeline_mode<synchronous>, transform_indices = @transform_4, window_bounds = array<i64: 128, 128>}, {pipeline_mode = #tpu.pipeline_mode<synchronous>, transform_indices = @transform_5, window_bounds = array<i64: 1, 128>}, {pipeline_mode = #tpu.pipeline_mode<synchronous>, transform_indices = @transform_6, window_bounds = array<i64: 128, 128>}, {pipeline_mode = #tpu.pipeline_mode<synchronous>, transform_indices = @transform_7, window_bounds = array<i64: 1, 128>}, {pipeline_mode = #tpu.pipeline_mode<synchronous>, transform_indices = @transform_8, window_bounds = array<i64: 128, 128>}, {pipeline_mode = #tpu.pipeline_mode<synchronous>, transform_indices = @transform_9, window_bounds = array<i64: 1, 128>}, {pipeline_mode = #tpu.pipeline_mode<synchronous>, transform_indices = @transform_10, window_bounds = array<i64: 128, 128>}, {pipeline_mode = #tpu.pipeline_mode<synchronous>, transform_indices = @transform_11, window_bounds = array<i64: 1, 128>}, {pipeline_mode = #tpu.pipeline_mode<synchronous>, transform_indices = @transform_12, window_bounds = array<i64: 128, 128>}, {pipeline_mode = #tpu.pipeline_mode<synchronous>, transform_indices = @transform_13, window_bounds = array<i64: 1, 128>}, {pipeline_mode = #tpu.pipeline_mode<synchronous>, transform_indices = @transform_14, window_bounds = array<i64: 128, 128>}, {pipeline_mode = #tpu.pipeline_mode<synchronous>, transform_indices = @transform_15, window_bounds = array<i64: 1, 128>}, {pipeline_mode = #tpu.pipeline_mode<synchronous>, transform_indices = @transform_16, window_bounds = array<i64: 128, 128>}, {pipeline_mode = #tpu.pipeline_mode<synchronous>, transform_indices = @transform_17, window_bounds = array<i64: 1, 128>}, {transform_indices = @transform_18, window_bounds = array<i64: 8, 128>}]} {
    %c0 = arith.constant 0 : index
    %c0_0 = arith.constant 0 : index
    %0 = vector.load %arg1[%c0, %c0_0] : memref<8x128xf32, #tpu.memory_space<vmem>>, vector<8x128xf32>
    %cst = arith.constant dense<0.000000e+00> : vector<8xf32>
    %1 = vector.multi_reduction <add>, %0, %cst [1] : vector<8x128xf32> to vector<8xf32>
    %2 = vector.shape_cast %1 : vector<8xf32> to vector<8x1xf32>
    %cst_1 = arith.constant 3.125000e-02 : f32
    %3 = vector.broadcast %cst_1 : f32 to vector<8x1xf32>
    %4 = arith.mulf %2, %3 : vector<8x1xf32>
    %5 = vector.broadcast %4 : vector<8x1xf32> to vector<8x128xf32>
    %6 = arith.subf %0, %5 : vector<8x128xf32>
    %c0_2 = arith.constant 0 : index
    %c0_3 = arith.constant 0 : index
    %7 = vector.load %arg4[%c0_2, %c0_3] : memref<1x128xf32, #tpu.memory_space<vmem>>, vector<1x128xf32>
    %8 = vector.broadcast %7 : vector<1x128xf32> to vector<8x128xf32>
    %9 = arith.mulf %6, %8 : vector<8x128xf32>
    %10 = arith.mulf %9, %9 : vector<8x128xf32>
    %cst_4 = arith.constant dense<0.000000e+00> : vector<8xf32>
    %11 = vector.multi_reduction <add>, %10, %cst_4 [1] : vector<8x128xf32> to vector<8xf32>
    %12 = vector.shape_cast %11 : vector<8xf32> to vector<8x1xf32>
    %cst_5 = arith.constant 3.125000e-02 : f32
    %13 = vector.broadcast %cst_5 : f32 to vector<8x1xf32>
    %14 = arith.mulf %12, %13 : vector<8x1xf32>
    %cst_6 = arith.constant 9.99999974E-6 : f32
    %15 = vector.broadcast %cst_6 : f32 to vector<8x1xf32>
    %16 = arith.addf %14, %15 : vector<8x1xf32>
    %17 = math.rsqrt %16 : vector<8x1xf32>
    %18 = vector.broadcast %17 : vector<8x1xf32> to vector<8x128xf32>
    %19 = arith.mulf %6, %18 : vector<8x128xf32>
    %c0_7 = arith.constant 0 : index
    %c0_8 = arith.constant 0 : index
    %20 = vector.load %arg2[%c0_7, %c0_8] : memref<1x128xf32, #tpu.memory_space<vmem>>, vector<1x128xf32>
    %21 = vector.broadcast %20 : vector<1x128xf32> to vector<8x128xf32>
    %22 = arith.mulf %19, %21 : vector<8x128xf32>
    %c0_9 = arith.constant 0 : index
    %c0_10 = arith.constant 0 : index
    %23 = vector.load %arg3[%c0_9, %c0_10] : memref<1x128xf32, #tpu.memory_space<vmem>>, vector<1x128xf32>
    %24 = vector.broadcast %23 : vector<1x128xf32> to vector<8x128xf32>
    %25 = arith.addf %22, %24 : vector<8x128xf32>
    %26 = arith.truncf %25 : vector<8x128xf32> to vector<8x128xbf16>
    %c0_11 = arith.constant 0 : index
    %c0_12 = arith.constant 0 : index
    %27 = vector.load %arg5[%c0_11, %c0_12] : memref<128x128xbf16, #tpu.memory_space<vmem>>, vector<128x128xbf16>
    %cst_13 = arith.constant dense<0.000000e+00> : vector<8x128xf32>
    %28 = tpu.matmul %26, %27, %cst_13 {dimension_numbers = #tpu.dot_dimension_numbers<[1], [0], [0], [1], [0, 0, 1, 1], [], []>} : vector<8x128xbf16>, vector<128x128xbf16>, vector<8x128xf32> -> vector<8x128xf32>
    %c0_14 = arith.constant 0 : index
    %c0_15 = arith.constant 0 : index
    %29 = vector.load %arg6[%c0_14, %c0_15] : memref<1x128xf32, #tpu.memory_space<vmem>>, vector<1x128xf32>
    %30 = vector.broadcast %29 : vector<1x128xf32> to vector<8x128xf32>
    %31 = arith.addf %28, %30 : vector<8x128xf32>
    %cst_16 = arith.constant 0.000000e+00 : f32
    %32 = vector.broadcast %cst_16 : f32 to vector<8x128xf32>
    %33 = arith.maximumf %31, %32 : vector<8x128xf32>
    %34 = arith.truncf %33 : vector<8x128xf32> to vector<8x128xbf16>
    %c0_17 = arith.constant 0 : index
    %c0_18 = arith.constant 0 : index
    %35 = vector.load %arg7[%c0_17, %c0_18] : memref<128x128xbf16, #tpu.memory_space<vmem>>, vector<128x128xbf16>
    %cst_19 = arith.constant dense<0.000000e+00> : vector<8x128xf32>
    %36 = tpu.matmul %34, %35, %cst_19 {dimension_numbers = #tpu.dot_dimension_numbers<[1], [0], [0], [1], [0, 0, 1, 1], [], []>} : vector<8x128xbf16>, vector<128x128xbf16>, vector<8x128xf32> -> vector<8x128xf32>
    %c0_20 = arith.constant 0 : index
    %c0_21 = arith.constant 0 : index
    %37 = vector.load %arg8[%c0_20, %c0_21] : memref<1x128xf32, #tpu.memory_space<vmem>>, vector<1x128xf32>
    %38 = vector.broadcast %37 : vector<1x128xf32> to vector<8x128xf32>
    %39 = arith.addf %36, %38 : vector<8x128xf32>
    %cst_22 = arith.constant 0.000000e+00 : f32
    %40 = vector.broadcast %cst_22 : f32 to vector<8x128xf32>
    %41 = arith.maximumf %39, %40 : vector<8x128xf32>
    %42 = arith.addf %41, %25 : vector<8x128xf32>
    %43 = arith.truncf %42 : vector<8x128xf32> to vector<8x128xbf16>
    %c0_23 = arith.constant 0 : index
    %c0_24 = arith.constant 0 : index
    %44 = vector.load %arg9[%c0_23, %c0_24] : memref<128x128xbf16, #tpu.memory_space<vmem>>, vector<128x128xbf16>
    %cst_25 = arith.constant dense<0.000000e+00> : vector<8x128xf32>
    %45 = tpu.matmul %43, %44, %cst_25 {dimension_numbers = #tpu.dot_dimension_numbers<[1], [0], [0], [1], [0, 0, 1, 1], [], []>} : vector<8x128xbf16>, vector<128x128xbf16>, vector<8x128xf32> -> vector<8x128xf32>
    %c0_26 = arith.constant 0 : index
    %c0_27 = arith.constant 0 : index
    %46 = vector.load %arg10[%c0_26, %c0_27] : memref<1x128xf32, #tpu.memory_space<vmem>>, vector<1x128xf32>
    %47 = vector.broadcast %46 : vector<1x128xf32> to vector<8x128xf32>
    %48 = arith.addf %45, %47 : vector<8x128xf32>
    %cst_28 = arith.constant 0.000000e+00 : f32
    %49 = vector.broadcast %cst_28 : f32 to vector<8x128xf32>
    %50 = arith.maximumf %48, %49 : vector<8x128xf32>
    %51 = arith.truncf %50 : vector<8x128xf32> to vector<8x128xbf16>
    %c0_29 = arith.constant 0 : index
    %c0_30 = arith.constant 0 : index
    %52 = vector.load %arg11[%c0_29, %c0_30] : memref<128x128xbf16, #tpu.memory_space<vmem>>, vector<128x128xbf16>
    %cst_31 = arith.constant dense<0.000000e+00> : vector<8x128xf32>
    %53 = tpu.matmul %51, %52, %cst_31 {dimension_numbers = #tpu.dot_dimension_numbers<[1], [0], [0], [1], [0, 0, 1, 1], [], []>} : vector<8x128xbf16>, vector<128x128xbf16>, vector<8x128xf32> -> vector<8x128xf32>
    %c0_32 = arith.constant 0 : index
    %c0_33 = arith.constant 0 : index
    %54 = vector.load %arg12[%c0_32, %c0_33] : memref<1x128xf32, #tpu.memory_space<vmem>>, vector<1x128xf32>
    %55 = vector.broadcast %54 : vector<1x128xf32> to vector<8x128xf32>
    %56 = arith.addf %53, %55 : vector<8x128xf32>
    %cst_34 = arith.constant 0.000000e+00 : f32
    %57 = vector.broadcast %cst_34 : f32 to vector<8x128xf32>
    %58 = arith.maximumf %56, %57 : vector<8x128xf32>
    %59 = arith.addf %58, %42 : vector<8x128xf32>
    %60 = arith.truncf %59 : vector<8x128xf32> to vector<8x128xbf16>
    %c0_35 = arith.constant 0 : index
    %c0_36 = arith.constant 0 : index
    %61 = vector.load %arg13[%c0_35, %c0_36] : memref<128x128xbf16, #tpu.memory_space<vmem>>, vector<128x128xbf16>
    %cst_37 = arith.constant dense<0.000000e+00> : vector<8x128xf32>
    %62 = tpu.matmul %60, %61, %cst_37 {dimension_numbers = #tpu.dot_dimension_numbers<[1], [0], [0], [1], [0, 0, 1, 1], [], []>} : vector<8x128xbf16>, vector<128x128xbf16>, vector<8x128xf32> -> vector<8x128xf32>
    %c0_38 = arith.constant 0 : index
    %c0_39 = arith.constant 0 : index
    %63 = vector.load %arg14[%c0_38, %c0_39] : memref<1x128xf32, #tpu.memory_space<vmem>>, vector<1x128xf32>
    %64 = vector.broadcast %63 : vector<1x128xf32> to vector<8x128xf32>
    %65 = arith.addf %62, %64 : vector<8x128xf32>
    %cst_40 = arith.constant 0.000000e+00 : f32
    %66 = vector.broadcast %cst_40 : f32 to vector<8x128xf32>
    %67 = arith.maximumf %65, %66 : vector<8x128xf32>
    %68 = arith.truncf %67 : vector<8x128xf32> to vector<8x128xbf16>
    %c0_41 = arith.constant 0 : index
    %c0_42 = arith.constant 0 : index
    %69 = vector.load %arg15[%c0_41, %c0_42] : memref<128x128xbf16, #tpu.memory_space<vmem>>, vector<128x128xbf16>
    %cst_43 = arith.constant dense<0.000000e+00> : vector<8x128xf32>
    %70 = tpu.matmul %68, %69, %cst_43 {dimension_numbers = #tpu.dot_dimension_numbers<[1], [0], [0], [1], [0, 0, 1, 1], [], []>} : vector<8x128xbf16>, vector<128x128xbf16>, vector<8x128xf32> -> vector<8x128xf32>
    %c0_44 = arith.constant 0 : index
    %c0_45 = arith.constant 0 : index
    %71 = vector.load %arg16[%c0_44, %c0_45] : memref<1x128xf32, #tpu.memory_space<vmem>>, vector<1x128xf32>
    %72 = vector.broadcast %71 : vector<1x128xf32> to vector<8x128xf32>
    %73 = arith.addf %70, %72 : vector<8x128xf32>
    %cst_46 = arith.constant 0.000000e+00 : f32
    %74 = vector.broadcast %cst_46 : f32 to vector<8x128xf32>
    %75 = arith.maximumf %73, %74 : vector<8x128xf32>
    %76 = arith.addf %75, %59 : vector<8x128xf32>
    %77 = arith.truncf %76 : vector<8x128xf32> to vector<8x128xbf16>
    %c0_47 = arith.constant 0 : index
    %c0_48 = arith.constant 0 : index
    %78 = vector.load %arg17[%c0_47, %c0_48] : memref<128x128xbf16, #tpu.memory_space<vmem>>, vector<128x128xbf16>
    %cst_49 = arith.constant dense<0.000000e+00> : vector<8x128xf32>
    %79 = tpu.matmul %77, %78, %cst_49 {dimension_numbers = #tpu.dot_dimension_numbers<[1], [0], [0], [1], [0, 0, 1, 1], [], []>} : vector<8x128xbf16>, vector<128x128xbf16>, vector<8x128xf32> -> vector<8x128xf32>
    %c0_50 = arith.constant 0 : index
    %c0_51 = arith.constant 0 : index
    %80 = vector.load %arg18[%c0_50, %c0_51] : memref<1x128xf32, #tpu.memory_space<vmem>>, vector<1x128xf32>
    %81 = vector.broadcast %80 : vector<1x128xf32> to vector<8x128xf32>
    %82 = arith.addf %79, %81 : vector<8x128xf32>
    %83 = arith.negf %82 : vector<8x128xf32>
    %84 = math.exp %83 : vector<8x128xf32>
    %cst_52 = arith.constant 1.000000e+00 : f32
    %85 = vector.broadcast %cst_52 : f32 to vector<8x128xf32>
    %86 = arith.addf %85, %84 : vector<8x128xf32>
    %87 = arith.divf %85, %86 : vector<8x128xf32>
    %88 = arith.truncf %87 : vector<8x128xf32> to vector<8x128xbf16>
    %c0_53 = arith.constant 0 : index
    %c0_54 = arith.constant 0 : index
    %89 = vector.load %arg19[%c0_53, %c0_54] : memref<8x128xbf16, #tpu.memory_space<vmem>>, vector<8x128xbf16>
    tpu.vector_store %arg19[%c0_53, %c0_54], %88 {strides = array<i32>} : memref<8x128xbf16, #tpu.memory_space<vmem>>, vector<8x128xbf16>,
    return
  }
  func.func @transform_0(%arg0: i32) -> (i32, i32) {
    %c0_i32 = arith.constant 0 : i32
    %c0_i32_0 = arith.constant 0 : i32
    return %arg0, %c0_i32 : i32, i32
  }
  func.func @transform_1(%arg0: i32) -> (i32, i32) {
    %c0_i32 = arith.constant 0 : i32
    %c0_i32_0 = arith.constant 0 : i32
    %c0_i32_1 = arith.constant 0 : i32
    return %c0_i32, %c0_i32_0 : i32, i32
  }
  func.func @transform_2(%arg0: i32) -> (i32, i32) {
    %c0_i32 = arith.constant 0 : i32
    %c0_i32_0 = arith.constant 0 : i32
    %c0_i32_1 = arith.constant 0 : i32
    return %c0_i32, %c0_i32_0 : i32, i32
  }
  func.func @transform_3(%arg0: i32) -> (i32, i32) {
    %c0_i32 = arith.constant 0 : i32
    %c0_i32_0 = arith.constant 0 : i32
    %c0_i32_1 = arith.constant 0 : i32
    return %c0_i32, %c0_i32_0 : i32, i32
  }
  func.func @transform_4(%arg0: i32) -> (i32, i32) {
    %c0_i32 = arith.constant 0 : i32
    %c0_i32_0 = arith.constant 0 : i32
    %c0_i32_1 = arith.constant 0 : i32
    return %c0_i32, %c0_i32_0 : i32, i32
  }
  func.func @transform_5(%arg0: i32) -> (i32, i32) {
    %c0_i32 = arith.constant 0 : i32
    %c0_i32_0 = arith.constant 0 : i32
    %c0_i32_1 = arith.constant 0 : i32
    return %c0_i32, %c0_i32_0 : i32, i32
  }
  func.func @transform_6(%arg0: i32) -> (i32, i32) {
    %c0_i32 = arith.constant 0 : i32
    %c0_i32_0 = arith.constant 0 : i32
    %c0_i32_1 = arith.constant 0 : i32
    return %c0_i32, %c0_i32_0 : i32, i32
  }
  func.func @transform_7(%arg0: i32) -> (i32, i32) {
    %c0_i32 = arith.constant 0 : i32
    %c0_i32_0 = arith.constant 0 : i32
    %c0_i32_1 = arith.constant 0 : i32
    return %c0_i32, %c0_i32_0 : i32, i32
  }
  func.func @transform_8(%arg0: i32) -> (i32, i32) {
    %c0_i32 = arith.constant 0 : i32
    %c0_i32_0 = arith.constant 0 : i32
    %c0_i32_1 = arith.constant 0 : i32
    return %c0_i32, %c0_i32_0 : i32, i32
  }
  func.func @transform_9(%arg0: i32) -> (i32, i32) {
    %c0_i32 = arith.constant 0 : i32
    %c0_i32_0 = arith.constant 0 : i32
    %c0_i32_1 = arith.constant 0 : i32
    return %c0_i32, %c0_i32_0 : i32, i32
  }
  func.func @transform_10(%arg0: i32) -> (i32, i32) {
    %c0_i32 = arith.constant 0 : i32
    %c0_i32_0 = arith.constant 0 : i32
    %c0_i32_1 = arith.constant 0 : i32
    return %c0_i32, %c0_i32_0 : i32, i32
  }
  func.func @transform_11(%arg0: i32) -> (i32, i32) {
    %c0_i32 = arith.constant 0 : i32
    %c0_i32_0 = arith.constant 0 : i32
    %c0_i32_1 = arith.constant 0 : i32
    return %c0_i32, %c0_i32_0 : i32, i32
  }
  func.func @transform_12(%arg0: i32) -> (i32, i32) {
    %c0_i32 = arith.constant 0 : i32
    %c0_i32_0 = arith.constant 0 : i32
    %c0_i32_1 = arith.constant 0 : i32
    return %c0_i32, %c0_i32_0 : i32, i32
  }
  func.func @transform_13(%arg0: i32) -> (i32, i32) {
    %c0_i32 = arith.constant 0 : i32
    %c0_i32_0 = arith.constant 0 : i32
    %c0_i32_1 = arith.constant 0 : i32
    return %c0_i32, %c0_i32_0 : i32, i32
  }
  func.func @transform_14(%arg0: i32) -> (i32, i32) {
    %c0_i32 = arith.constant 0 : i32
    %c0_i32_0 = arith.constant 0 : i32
    %c0_i32_1 = arith.constant 0 : i32
    return %c0_i32, %c0_i32_0 : i32, i32
  }
  func.func @transform_15(%arg0: i32) -> (i32, i32) {
    %c0_i32 = arith.constant 0 : i32
    %c0_i32_0 = arith.constant 0 : i32
    %c0_i32_1 = arith.constant 0 : i32
    return %c0_i32, %c0_i32_0 : i32, i32
  }
  func.func @transform_16(%arg0: i32) -> (i32, i32) {
    %c0_i32 = arith.constant 0 : i32
    %c0_i32_0 = arith.constant 0 : i32
    %c0_i32_1 = arith.constant 0 : i32
    return %c0_i32, %c0_i32_0 : i32, i32
  }
  func.func @transform_17(%arg0: i32) -> (i32, i32) {
    %c0_i32 = arith.constant 0 : i32
    %c0_i32_0 = arith.constant 0 : i32
    %c0_i32_1 = arith.constant 0 : i32
    return %c0_i32, %c0_i32_0 : i32, i32
  }
  func.func @transform_18(%arg0: i32) -> (i32, i32) {
    %c0_i32 = arith.constant 0 : i32
    %c0_i32_0 = arith.constant 0 : i32
    return %arg0, %c0_i32 : i32, i32
  }
}

module attributes {stable_mosaic.version = 11 : i64} {
  func.func @_fasttext_kernel(%arg0: i32, %arg1: memref<8x128xf32, #tpu.memory_space<vmem>>, %arg2: memref<1x128xf32, #tpu.memory_space<vmem>>, %arg3: memref<1x128xf32, #tpu.memory_space<vmem>>, %arg4: memref<1x128xf32, #tpu.memory_space<vmem>>, %arg5: memref<128x128xbf16, #tpu.memory_space<vmem>>, %arg6: memref<1x128xf32, #tpu.memory_space<vmem>>, %arg7: memref<128x128xbf16, #tpu.memory_space<vmem>>, %arg8: memref<1x128xf32, #tpu.memory_space<vmem>>, %arg9: memref<128x128xbf16, #tpu.memory_space<vmem>>, %arg10: memref<1x128xf32, #tpu.memory_space<vmem>>, %arg11: memref<128x128xbf16, #tpu.memory_space<vmem>>, %arg12: memref<1x128xf32, #tpu.memory_space<vmem>>, %arg13: memref<128x128xbf16, #tpu.memory_space<vmem>>, %arg14: memref<1x128xf32, #tpu.memory_space<vmem>>, %arg15: memref<128x128xbf16, #tpu.memory_space<vmem>>, %arg16: memref<1x128xf32, #tpu.memory_space<vmem>>, %arg17: memref<128x128xbf16, #tpu.memory_space<vmem>>, %arg18: memref<1x128xf32, #tpu.memory_space<vmem>>, %arg19: memref<8x128xbf16, #tpu.memory_space<vmem>>) attributes {dimension_semantics = [#tpu.dimension_semantics<parallel>], iteration_bounds = array<i64: 2>, scalar_prefetch = 0 : i64, scratch_operands = 0 : i64, tpu.core_type = #tpu.core_type<tc>, window_params = [{transform_indices = @transform_0, window_bounds = array<i64: 8, 128>}, {pipeline_mode = #tpu.pipeline_mode<synchronous>, transform_indices = @transform_1, window_bounds = array<i64: 1, 128>}, {pipeline_mode = #tpu.pipeline_mode<synchronous>, transform_indices = @transform_2, window_bounds = array<i64: 1, 128>}, {pipeline_mode = #tpu.pipeline_mode<synchronous>, transform_indices = @transform_3, window_bounds = array<i64: 1, 128>}, {pipeline_mode = #tpu.pipeline_mode<synchronous>, transform_indices = @transform_4, window_bounds = array<i64: 128, 128>}, {pipeline_mode = #tpu.pipeline_mode<synchronous>, transform_indices = @transform_5, window_bounds = array<i64: 1, 128>}, {pipeline_mode = #tpu.pipeline_mode<synchronous>, transform_indices = @transform_6, window_bounds = array<i64: 128, 128>}, {pipeline_mode = #tpu.pipeline_mode<synchronous>, transform_indices = @transform_7, window_bounds = array<i64: 1, 128>}, {pipeline_mode = #tpu.pipeline_mode<synchronous>, transform_indices = @transform_8, window_bounds = array<i64: 128, 128>}, {pipeline_mode = #tpu.pipeline_mode<synchronous>, transform_indices = @transform_9, window_bounds = array<i64: 1, 128>}, {pipeline_mode = #tpu.pipeline_mode<synchronous>, transform_indices = @transform_10, window_bounds = array<i64: 128, 128>}, {pipeline_mode = #tpu.pipeline_mode<synchronous>, transform_indices = @transform_11, window_bounds = array<i64: 1, 128>}, {pipeline_mode = #tpu.pipeline_mode<synchronous>, transform_indices = @transform_12, window_bounds = array<i64: 128, 128>}, {pipeline_mode = #tpu.pipeline_mode<synchronous>, transform_indices = @transform_13, window_bounds = array<i64: 1, 128>}, {pipeline_mode = #tpu.pipeline_mode<synchronous>, transform_indices = @transform_14, window_bounds = array<i64: 128, 128>}, {pipeline_mode = #tpu.pipeline_mode<synchronous>, transform_indices = @transform_15, window_bounds = array<i64: 1, 128>}, {pipeline_mode = #tpu.pipeline_mode<synchronous>, transform_indices = @transform_16, window_bounds = array<i64: 128, 128>}, {pipeline_mode = #tpu.pipeline_mode<synchronous>, transform_indices = @transform_17, window_bounds = array<i64: 1, 128>}, {transform_indices = @transform_18, window_bounds = array<i64: 8, 128>}]} {
    %c0 = arith.constant 0 : index
    %c0_0 = arith.constant 0 : index
    %0 = vector.load %arg1[%c0, %c0_0] : memref<8x128xf32, #tpu.memory_space<vmem>>, vector<8x128xf32>
    %cst = arith.constant dense<0.000000e+00> : vector<8xf32>
    %1 = vector.multi_reduction <add>, %0, %cst [1] : vector<8x128xf32> to vector<8xf32>
    %2 = vector.shape_cast %1 : vector<8xf32> to vector<8x1xf32>
    %cst_1 = arith.constant 3.125000e-02 : f32
    %3 = vector.broadcast %cst_1 : f32 to vector<8x1xf32>
    %4 = arith.mulf %2, %3 : vector<8x1xf32>
    %5 = vector.broadcast %4 : vector<8x1xf32> to vector<8x128xf32>
    %6 = arith.subf %0, %5 : vector<8x128xf32>
    %c0_2 = arith.constant 0 : index
    %c0_3 = arith.constant 0 : index
    %7 = vector.load %arg4[%c0_2, %c0_3] : memref<1x128xf32, #tpu.memory_space<vmem>>, vector<1x128xf32>
    %8 = vector.broadcast %7 : vector<1x128xf32> to vector<8x128xf32>
    %9 = arith.mulf %6, %8 : vector<8x128xf32>
    %10 = arith.mulf %9, %9 : vector<8x128xf32>
    %cst_4 = arith.constant dense<0.000000e+00> : vector<8xf32>
    %11 = vector.multi_reduction <add>, %10, %cst_4 [1] : vector<8x128xf32> to vector<8xf32>
    %12 = vector.shape_cast %11 : vector<8xf32> to vector<8x1xf32>
    %cst_5 = arith.constant 3.125000e-02 : f32
    %13 = vector.broadcast %cst_5 : f32 to vector<8x1xf32>
    %14 = arith.mulf %12, %13 : vector<8x1xf32>
    %cst_6 = arith.constant 9.99999974E-6 : f32
    %15 = vector.broadcast %cst_6 : f32 to vector<8x1xf32>
    %16 = arith.addf %14, %15 : vector<8x1xf32>
    %17 = math.rsqrt %16 : vector<8x1xf32>
    %18 = vector.broadcast %17 : vector<8x1xf32> to vector<8x128xf32>
    %19 = arith.mulf %6, %18 : vector<8x128xf32>
    %c0_7 = arith.constant 0 : index
    %c0_8 = arith.constant 0 : index
    %20 = vector.load %arg2[%c0_7, %c0_8] : memref<1x128xf32, #tpu.memory_space<vmem>>, vector<1x128xf32>
    %21 = vector.broadcast %20 : vector<1x128xf32> to vector<8x128xf32>
    %22 = arith.mulf %19, %21 : vector<8x128xf32>
    %c0_9 = arith.constant 0 : index
    %c0_10 = arith.constant 0 : index
    %23 = vector.load %arg3[%c0_9, %c0_10] : memref<1x128xf32, #tpu.memory_space<vmem>>, vector<1x128xf32>
    %24 = vector.broadcast %23 : vector<1x128xf32> to vector<8x128xf32>
    %25 = arith.addf %22, %24 : vector<8x128xf32>
    %26 = arith.truncf %25 : vector<8x128xf32> to vector<8x128xbf16>
    %c0_11 = arith.constant 0 : index
    %c0_12 = arith.constant 0 : index
    %27 = vector.load %arg5[%c0_11, %c0_12] : memref<128x128xbf16, #tpu.memory_space<vmem>>, vector<128x128xbf16>
    %cst_13 = arith.constant dense<0.000000e+00> : vector<8x128xf32>
    %28 = tpu.matmul %26, %27, %cst_13 {dimension_numbers = #tpu.dot_dimension_numbers<[1], [0], [0], [1], [0, 0, 1, 1], [], []>} : vector<8x128xbf16>, vector<128x128xbf16>, vector<8x128xf32> -> vector<8x128xf32>
    %c0_14 = arith.constant 0 : index
    %c0_15 = arith.constant 0 : index
    %29 = vector.load %arg6[%c0_14, %c0_15] : memref<1x128xf32, #tpu.memory_space<vmem>>, vector<1x128xf32>
    %30 = vector.broadcast %29 : vector<1x128xf32> to vector<8x128xf32>
    %31 = arith.addf %28, %30 : vector<8x128xf32>
    %cst_16 = arith.constant 0.000000e+00 : f32
    %32 = vector.broadcast %cst_16 : f32 to vector<8x128xf32>
    %33 = arith.maximumf %31, %32 : vector<8x128xf32>
    %34 = arith.truncf %33 : vector<8x128xf32> to vector<8x128xbf16>
    %c0_17 = arith.constant 0 : index
    %c0_18 = arith.constant 0 : index
    %35 = vector.load %arg7[%c0_17, %c0_18] : memref<128x128xbf16, #tpu.memory_space<vmem>>, vector<128x128xbf16>
    %cst_19 = arith.constant dense<0.000000e+00> : vector<8x128xf32>
    %36 = tpu.matmul %34, %35, %cst_19 {dimension_numbers = #tpu.dot_dimension_numbers<[1], [0], [0], [1], [0, 0, 1, 1], [], []>} : vector<8x128xbf16>, vector<128x128xbf16>, vector<8x128xf32> -> vector<8x128xf32>
    %c0_20 = arith.constant 0 : index
    %c0_21 = arith.constant 0 : index
    %37 = vector.load %arg8[%c0_20, %c0_21] : memref<1x128xf32, #tpu.memory_space<vmem>>, vector<1x128xf32>
    %38 = vector.broadcast %37 : vector<1x128xf32> to vector<8x128xf32>
    %39 = arith.addf %36, %38 : vector<8x128xf32>
    %cst_22 = arith.constant 0.000000e+00 : f32
    %40 = vector.broadcast %cst_22 : f32 to vector<8x128xf32>
    %41 = arith.maximumf %39, %40 : vector<8x128xf32>
    %42 = arith.addf %41, %25 : vector<8x128xf32>
    %43 = arith.truncf %42 : vector<8x128xf32> to vector<8x128xbf16>
    %c0_23 = arith.constant 0 : index
    %c0_24 = arith.constant 0 : index
    %44 = vector.load %arg9[%c0_23, %c0_24] : memref<128x128xbf16, #tpu.memory_space<vmem>>, vector<128x128xbf16>
    %cst_25 = arith.constant dense<0.000000e+00> : vector<8x128xf32>
    %45 = tpu.matmul %43, %44, %cst_25 {dimension_numbers = #tpu.dot_dimension_numbers<[1], [0], [0], [1], [0, 0, 1, 1], [], []>} : vector<8x128xbf16>, vector<128x128xbf16>, vector<8x128xf32> -> vector<8x128xf32>
    %c0_26 = arith.constant 0 : index
    %c0_27 = arith.constant 0 : index
    %46 = vector.load %arg10[%c0_26, %c0_27] : memref<1x128xf32, #tpu.memory_space<vmem>>, vector<1x128xf32>
    %47 = vector.broadcast %46 : vector<1x128xf32> to vector<8x128xf32>
    %48 = arith.addf %45, %47 : vector<8x128xf32>
    %cst_28 = arith.constant 0.000000e+00 : f32
    %49 = vector.broadcast %cst_28 : f32 to vector<8x128xf32>
    %50 = arith.maximumf %48, %49 : vector<8x128xf32>
    %51 = arith.truncf %50 : vector<8x128xf32> to vector<8x128xbf16>
    %c0_29 = arith.constant 0 : index
    %c0_30 = arith.constant 0 : index
    %52 = vector.load %arg11[%c0_29, %c0_30] : memref<128x128xbf16, #tpu.memory_space<vmem>>, vector<128x128xbf16>
    %cst_31 = arith.constant dense<0.000000e+00> : vector<8x128xf32>
    %53 = tpu.matmul %51, %52, %cst_31 {dimension_numbers = #tpu.dot_dimension_numbers<[1], [0], [0], [1], [0, 0, 1, 1], [], []>} : vector<8x128xbf16>, vector<128x128xbf16>, vector<8x128xf32> -> vector<8x128xf32>
    %c0_32 = arith.constant 0 : index
    %c0_33 = arith.constant 0 : index
    %54 = vector.load %arg12[%c0_32, %c0_33] : memref<1x128xf32, #tpu.memory_space<vmem>>, vector<1x128xf32>
    %55 = vector.broadcast %54 : vector<1x128xf32> to vector<8x128xf32>
    %56 = arith.addf %53, %55 : vector<8x128xf32>
    %cst_34 = arith.constant 0.000000e+00 : f32
    %57 = vector.broadcast %cst_34 : f32 to vector<8x128xf32>
    %58 = arith.maximumf %56, %57 : vector<8x128xf32>
    %59 = arith.addf %58, %42 : vector<8x128xf32>
    %60 = arith.truncf %59 : vector<8x128xf32> to vector<8x128xbf16>
    %c0_35 = arith.constant 0 : index
    %c0_36 = arith.constant 0 : index
    %61 = vector.load %arg13[%c0_35, %c0_36] : memref<128x128xbf16, #tpu.memory_space<vmem>>, vector<128x128xbf16>
    %cst_37 = arith.constant dense<0.000000e+00> : vector<8x128xf32>
    %62 = tpu.matmul %60, %61, %cst_37 {dimension_numbers = #tpu.dot_dimension_numbers<[1], [0], [0], [1], [0, 0, 1, 1], [], []>} : vector<8x128xbf16>, vector<128x128xbf16>, vector<8x128xf32> -> vector<8x128xf32>
    %c0_38 = arith.constant 0 : index
    %c0_39 = arith.constant 0 : index
    %63 = vector.load %arg14[%c0_38, %c0_39] : memref<1x128xf32, #tpu.memory_space<vmem>>, vector<1x128xf32>
    %64 = vector.broadcast %63 : vector<1x128xf32> to vector<8x128xf32>
    %65 = arith.addf %62, %64 : vector<8x128xf32>
    %cst_40 = arith.constant 0.000000e+00 : f32
    %66 = vector.broadcast %cst_40 : f32 to vector<8x128xf32>
    %67 = arith.maximumf %65, %66 : vector<8x128xf32>
    %68 = arith.truncf %67 : vector<8x128xf32> to vector<8x128xbf16>
    %c0_41 = arith.constant 0 : index
    %c0_42 = arith.constant 0 : index
    %69 = vector.load %arg15[%c0_41, %c0_42] : memref<128x128xbf16, #tpu.memory_space<vmem>>, vector<128x128xbf16>
    %cst_43 = arith.constant dense<0.000000e+00> : vector<8x128xf32>
    %70 = tpu.matmul %68, %69, %cst_43 {dimension_numbers = #tpu.dot_dimension_numbers<[1], [0], [0], [1], [0, 0, 1, 1], [], []>} : vector<8x128xbf16>, vector<128x128xbf16>, vector<8x128xf32> -> vector<8x128xf32>
    %c0_44 = arith.constant 0 : index
    %c0_45 = arith.constant 0 : index
    %71 = vector.load %arg16[%c0_44, %c0_45] : memref<1x128xf32, #tpu.memory_space<vmem>>, vector<1x128xf32>
    %72 = vector.broadcast %71 : vector<1x128xf32> to vector<8x128xf32>
    %73 = arith.addf %70, %72 : vector<8x128xf32>
    %cst_46 = arith.constant 0.000000e+00 : f32
    %74 = vector.broadcast %cst_46 : f32 to vector<8x128xf32>
    %75 = arith.maximumf %73, %74 : vector<8x128xf32>
    %76 = arith.addf %75, %59 : vector<8x128xf32>
    %77 = arith.truncf %76 : vector<8x128xf32> to vector<8x128xbf16>
    %c0_47 = arith.constant 0 : index
    %c0_48 = arith.constant 0 : index
    %78 = vector.load %arg17[%c0_47, %c0_48] : memref<128x128xbf16, #tpu.memory_space<vmem>>, vector<128x128xbf16>
    %cst_49 = arith.constant dense<0.000000e+00> : vector<8x128xf32>
    %79 = tpu.matmul %77, %78, %cst_49 {dimension_numbers = #tpu.dot_dimension_numbers<[1], [0], [0], [1], [0, 0, 1, 1], [], []>} : vector<8x128xbf16>, vector<128x128xbf16>, vector<8x128xf32> -> vector<8x128xf32>
    %c0_50 = arith.constant 0 : index
    %c0_51 = arith.constant 0 : index
    %80 = vector.load %arg18[%c0_50, %c0_51] : memref<1x128xf32, #tpu.memory_space<vmem>>, vector<1x128xf32>
    %81 = vector.broadcast %80 : vector<1x128xf32> to vector<8x128xf32>
    %82 = arith.addf %79, %81 : vector<8x128xf32>
    %83 = arith.negf %82 : vector<8x128xf32>
    %84 = math.exp %83 : vector<8x128xf32>
    %cst_52 = arith.constant 1.000000e+00 : f32
    %85 = vector.broadcast %cst_52 : f32 to vector<8x128xf32>
    %86 = arith.addf %85, %84 : vector<8x128xf32>
    %87 = arith.divf %85, %86 : vector<8x128xf32>
    %88 = arith.truncf %87 : vector<8x128xf32> to vector<8x128xbf16>
    %c0_53 = arith.constant 0 : index
    %c0_54 = arith.constant 0 : index
    %89 = vector.load %arg19[%c0_53, %c0_54] : memref<8x128xbf16, #tpu.memory_space<vmem>>, vector<8x128xbf16>
    tpu.vector_store %arg19[%c0_53, %c0_54], %88 {strides = array<i32>} : memref<8x128xbf16, #tpu.memory_space<vmem>>, vector<8x128xbf16>,
    return
  }
  func.func @transform_0(%arg0: i32) -> (i32, i32) {
    %c0_i32 = arith.constant 0 : i32
    %c0_i32_0 = arith.constant 0 : i32
    return %arg0, %c0_i32 : i32, i32
  }
  func.func @transform_1(%arg0: i32) -> (i32, i32) {
    %c0_i32 = arith.constant 0 : i32
    %c0_i32_0 = arith.constant 0 : i32
    %c0_i32_1 = arith.constant 0 : i32
    return %c0_i32, %c0_i32_0 : i32, i32
  }
  func.func @transform_2(%arg0: i32) -> (i32, i32) {
    %c0_i32 = arith.constant 0 : i32
    %c0_i32_0 = arith.constant 0 : i32
    %c0_i32_1 = arith.constant 0 : i32
    return %c0_i32, %c0_i32_0 : i32, i32
  }
  func.func @transform_3(%arg0: i32) -> (i32, i32) {
    %c0_i32 = arith.constant 0 : i32
    %c0_i32_0 = arith.constant 0 : i32
    %c0_i32_1 = arith.constant 0 : i32
    return %c0_i32, %c0_i32_0 : i32, i32
  }
  func.func @transform_4(%arg0: i32) -> (i32, i32) {
    %c0_i32 = arith.constant 0 : i32
    %c0_i32_0 = arith.constant 0 : i32
    %c0_i32_1 = arith.constant 0 : i32
    return %c0_i32, %c0_i32_0 : i32, i32
  }
  func.func @transform_5(%arg0: i32) -> (i32, i32) {
    %c0_i32 = arith.constant 0 : i32
    %c0_i32_0 = arith.constant 0 : i32
    %c0_i32_1 = arith.constant 0 : i32
    return %c0_i32, %c0_i32_0 : i32, i32
  }
  func.func @transform_6(%arg0: i32) -> (i32, i32) {
    %c0_i32 = arith.constant 0 : i32
    %c0_i32_0 = arith.constant 0 : i32
    %c0_i32_1 = arith.constant 0 : i32
    return %c0_i32, %c0_i32_0 : i32, i32
  }
  func.func @transform_7(%arg0: i32) -> (i32, i32) {
    %c0_i32 = arith.constant 0 : i32
    %c0_i32_0 = arith.constant 0 : i32
    %c0_i32_1 = arith.constant 0 : i32
    return %c0_i32, %c0_i32_0 : i32, i32
  }
  func.func @transform_8(%arg0: i32) -> (i32, i32) {
    %c0_i32 = arith.constant 0 : i32
    %c0_i32_0 = arith.constant 0 : i32
    %c0_i32_1 = arith.constant 0 : i32
    return %c0_i32, %c0_i32_0 : i32, i32
  }
  func.func @transform_9(%arg0: i32) -> (i32, i32) {
    %c0_i32 = arith.constant 0 : i32
    %c0_i32_0 = arith.constant 0 : i32
    %c0_i32_1 = arith.constant 0 : i32
    return %c0_i32, %c0_i32_0 : i32, i32
  }
  func.func @transform_10(%arg0: i32) -> (i32, i32) {
    %c0_i32 = arith.constant 0 : i32
    %c0_i32_0 = arith.constant 0 : i32
    %c0_i32_1 = arith.constant 0 : i32
    return %c0_i32, %c0_i32_0 : i32, i32
  }
  func.func @transform_11(%arg0: i32) -> (i32, i32) {
    %c0_i32 = arith.constant 0 : i32
    %c0_i32_0 = arith.constant 0 : i32
    %c0_i32_1 = arith.constant 0 : i32
    return %c0_i32, %c0_i32_0 : i32, i32
  }
  func.func @transform_12(%arg0: i32) -> (i32, i32) {
    %c0_i32 = arith.constant 0 : i32
    %c0_i32_0 = arith.constant 0 : i32
    %c0_i32_1 = arith.constant 0 : i32
    return %c0_i32, %c0_i32_0 : i32, i32
  }
  func.func @transform_13(%arg0: i32) -> (i32, i32) {
    %c0_i32 = arith.constant 0 : i32
    %c0_i32_0 = arith.constant 0 : i32
    %c0_i32_1 = arith.constant 0 : i32
    return %c0_i32, %c0_i32_0 : i32, i32
  }
  func.func @transform_14(%arg0: i32) -> (i32, i32) {
    %c0_i32 = arith.constant 0 : i32
    %c0_i32_0 = arith.constant 0 : i32
    %c0_i32_1 = arith.constant 0 : i32
    return %c0_i32, %c0_i32_0 : i32, i32
  }
  func.func @transform_15(%arg0: i32) -> (i32, i32) {
    %c0_i32 = arith.constant 0 : i32
    %c0_i32_0 = arith.constant 0 : i32
    %c0_i32_1 = arith.constant 0 : i32
    return %c0_i32, %c0_i32_0 : i32, i32
  }
  func.func @transform_16(%arg0: i32) -> (i32, i32) {
    %c0_i32 = arith.constant 0 : i32
    %c0_i32_0 = arith.constant 0 : i32
    %c0_i32_1 = arith.constant 0 : i32
    return %c0_i32, %c0_i32_0 : i32, i32
  }
  func.func @transform_17(%arg0: i32) -> (i32, i32) {
    %c0_i32 = arith.constant 0 : i32
    %c0_i32_0 = arith.constant 0 : i32
    %c0_i32_1 = arith.constant 0 : i32
    return %c0_i32, %c0_i32_0 : i32, i32
  }
  func.func @transform_18(%arg0: i32) -> (i32, i32) {
    %c0_i32 = arith.constant 0 : i32
    %c0_i32_0 = arith.constant 0 : i32
    return %arg0, %c0_i32 : i32, i32
  }
}

</mosaic_0001>

<bundles_post_ra>
// kernel: tpu_custom_call.1
= control target key start
LH: loop header
LB: loop body
LE: loop exit
PB: predicated region body
PF: predicated region fallthrough
CT: control target
= control target key end

     0   :  { %s3047_s0 = inlined_call_operand.hbm [shape: f32[16,128], index: 0, kind: input, shape index: {}]   ;;  %s3048_s1 = inlined_call_operand.vmem [shape: f32[1,128], index: 1, kind: input, shape index: {}]   ;;  %s3049_s2 = inlined_call_operand.vmem [shape: f32[1,128], index: 2, kind: input, shape index: {}]   ;;  %s3050_s3 = inlined_call_operand.vmem [shape: f32[1,128], index: 3, kind: input, shape index: {}]   ;;  %s3051_s4 = inlined_call_operand.hbm [shape: bf16[128,128], index: 4, kind: input, shape index: {}]   ;;  %s3052_s5 = inlined_call_operand.vmem [shape: f32[1,128], index: 5, kind: input, shape index: {}]   ;;  %s3053_s6 = inlined_call_operand.hbm [shape: bf16[128,128], index: 6, kind: input, shape index: {}]   ;;  %s3054_s7 = inlined_call_operand.vmem [shape: f32[1,128], index: 7, kind: input, shape index: {}]   ;;  %s3055_s8 = inlined_call_operand.hbm [shape: bf16[128,128], index: 8, kind: input, shape index: {}]   ;;  %s3056_s9 = inlined_call_operand.vmem [shape: f32[1,128], index: 9, kind: input, shape index: {}]   ;;  %s3057_s10 = inlined_call_operand.hbm [shape: bf16[128,128], index: 10, kind: input, shape index: {}]   ;;  %s3058_s11 = inlined_call_operand.vmem [shape: f32[1,128], index: 11, kind: input, shape index: {}]   ;;  %s3059_s12 = inlined_call_operand.hbm [shape: bf16[128,128], index: 12, kind: input, shape index: {}]   ;;  %s3060_s13 = inlined_call_operand.vmem [shape: f32[1,128], index: 13, kind: input, shape index: {}]   ;;  %s3061_s14 = inlined_call_operand.hbm [shape: bf16[128,128], index: 14, kind: input, shape index: {}]   ;;  %s3062_s15 = inlined_call_operand.vmem [shape: f32[1,128], index: 15, kind: input, shape index: {}]   ;;  %s3063_s16 = inlined_call_operand.hbm [shape: bf16[128,128], index: 16, kind: input, shape index: {}]   ;;  %s3064_s17 = inlined_call_operand.vmem [shape: f32[1,128], index: 17, kind: input, shape index: {}]   ;;  %s3065_s18 = inlined_call_operand.hbm [shape: bf16[16,128], index: 18, kind: output, shape index: {}]  }
   0x1   :  { %3071 = sst [smem:[#allocation23_spill]] %s3047_s0 }
   0x2   :  { %3072 = sst [smem:[#allocation24_spill]] %s3048_s1 }
   0x3   :  { %3073 = sst [smem:[#allocation25_spill]] %s3049_s2 }
   0x4   :  { %3074 = sst [smem:[#allocation26_spill]] %s3051_s4 }
   0x5   :  { %3075 = sst [smem:[#allocation27_spill]] %s3054_s7 }
   0x6   :  { %3076 = sst [smem:[#allocation28_spill]] %s3056_s9 }
   0x7   :  { %3077 = sst [smem:[#allocation29_spill]] %s3058_s11 }
   0x8   :  { %3078 = sst [smem:[#allocation30_spill]] %s3060_s13 }
   0x9   :  { %3079 = sst [smem:[#allocation31_spill]] %s3062_s15 }
   0xa   :  { %3080 = sst [smem:[#allocation32_spill]] %s3064_s17 }
   0xb   :  { %3081 = sst [smem:[#allocation33_spill]] %s3065_s18 }
   0xc   :  { %23 = vsyncpa [#allocation3], 0 }
   0xd   :  { %25 = vsyncpa [#allocation3 + $0x1], 0 }
   0xe   :  { %26 = vsyncpa [#allocation6], 0 }
   0xf   :  { %27 = vsyncpa [#allocation9], 0 }
  0x10   :  { %28 = vsyncpa [#allocation12], 0 }
  0x11   :  { %29 = vsyncpa [#allocation15], 0 }
  0x12   :  { %30 = vsyncpa [#allocation4], 0 }
  0x13   :  { %32 = vsyncpa [#allocation4 + $0x1], 0  ;;  %s2579_s27 = smov 0   ;;  %s2581_s28 = smov 0  }
  0x14   :  { %s2583_s29 = smov 0   ;;  %s2585_s30 = smov 0  }
  0x15 LB: > { %s2471_s0 = smov [#allocation5]   ;;  %s2600_s1 = sadd.s32 4294967295, %s2469_s30   ;;  %s2469_s30 = sphi %s2585_s30, %s3116_s30   ;;  %s2465_s29 = sphi %s2583_s29, %s3115_s29   ;;  %s2461_s28 = sphi %s2581_s28, %s3114_s28   ;;  %s2457_s27 = sphi %s2579_s27, %s3113_s27  }
  0x16   : > { %s473_s19 = sshll.u32 %s2471_s0, 4  ;;  %p1683_p0 = scmp.ge.s32.totalorder %s2469_s30, 1  ;;  %s2605_s19 = int_to_ptr.vmem [resolvable:$true] %s473_s19 }
  0x17   : > { %p3068_p1 = scmp.eq.s32.totalorder %s2600_s1, 0  ;;  %p452_p2 = scmp.lt.s32.totalorder %s2469_s30, 3 }
  0x18   : > { %s2472_s21 = smov [#allocation8]   ;;  %s2473_s23 = smov [#allocation11]  }
  0x19   : > { %p2607_p3 = pnand %p1683_p0, %p452_p2  ;;  %s505_s22 = sshll.u32 %s2472_s21, 4  ;;  %s2620_s22 = int_to_ptr.vmem [resolvable:$true] %s505_s22 }
  0x1a   : > { %s537_s24 = sshll.u32 %s2473_s23, 4  ;;  %s3084_s4 = sld [smem:[#allocation26_spill]]  ;;  %s2622_s24 = int_to_ptr.vmem [resolvable:$true] %s537_s24 }
  0x1b   : > { %s3082_s20 = scalar_select %p2607_p3, 1, 0 }
  0x1c   : > { %p2010_p5 = pneg %p2607_p3 }
  0x1e   : > { %p2616_p6 = pnand %p2010_p5, %p3068_p1 }
  0x20   : > { %s2161_s0 = scalar_lea.hbm %s3084_s4, 1024  ;;  %p2632_p8 = pneg %p2616_p6 }
  0x21   : > { %p2162_p7 = scmp.ne.s32.totalorder %s3084_s4, %s2161_s0  ;;  %p2168_p11 = scmp.lt.u32.totalorder %s2161_s0, %s3084_s4 }
  0x23   : > { %p2164_p9 = pnand %p2632_p8, %p2162_p7 }
  0x25   : > { %p2165_p10 = pneg %p2164_p9 }
  0x27   : > { %p2170_p12 = pnand %p2168_p11, %p2165_p10 }
  0x29   : > { %2173 = shalt.err (!%p2170_p12)
}
  0x2a   : > { %s2174_s17 = scalar_lea.vmem %s2605_s19, 1024  ;;  %p2182_p5 = scmp.lt.s32.totalorder %s2605_s19, %s2605_s19 }
  0x2b   : > { %p2175_p13 = scmp.ne.s32.totalorder %s2605_s19, %s2174_s17  ;;  %p2183_p4 = scmp.lt.s32.totalorder %s2174_s17, %s2174_s17 }
  0x2d   : > { %p2177_p0 = pnand %p2175_p13, %p2632_p8  ;;  %p2184_p7 = por %p2183_p4, %p2182_p5 }
  0x2f   : > { %p2178_p2 = pneg %p2177_p0 }
  0x31   : > { %p2185_p9 = pnand %p2184_p7, %p2178_p2 }
  0x33   : > { %2188 = shalt.err (!%p2185_p9)
}
  0x34   : > { %s2474_s18 = smov 64   ;;  %s2475_s15 = smov 4  }
  0x35   : > { %2013 = dma.hbm_to_vmem [thread:$0]  (!%p2616_p6), %s3084_s4, 1024, %s2605_s19, [#allocation6], %s2474_s18, %s2474_s18, %s2475_s15  }
  0x36   : > { %s2189_s17 = scalar_lea.hbm %s3055_s8, 1024 }
  0x37   : > { %p2190_p4 = scmp.ne.s32.totalorder %s3055_s8, %s2189_s17  ;;  %p2196_p12 = scmp.lt.u32.totalorder %s2189_s17, %s3055_s8 }
  0x39   : > { %p2192_p10 = pnand %p2190_p4, %p2632_p8 }
  0x3b   : > { %p2193_p11 = pneg %p2192_p10 }
  0x3d   : > { %p2198_p13 = pnand %p2196_p12, %p2193_p11 }
  0x3f   : > { %2201 = shalt.err (!%p2198_p13)
}
  0x40   : > { %s2202_s19 = scalar_lea.vmem %s2620_s22, 1024  ;;  %p2210_p7 = scmp.lt.s32.totalorder %s2620_s22, %s2620_s22 }
  0x41   : > { %p2203_p0 = scmp.ne.s32.totalorder %s2620_s22, %s2202_s19  ;;  %p2211_p9 = scmp.lt.s32.totalorder %s2202_s19, %s2202_s19 }
  0x43   : > { %p2205_p2 = pnand %p2203_p0, %p2632_p8  ;;  %p2212_p4 = por %p2211_p9, %p2210_p7 }
  0x45   : > { %p2206_p5 = pneg %p2205_p2 }
  0x47   : > { %p2213_p10 = pnand %p2212_p4, %p2206_p5 }
  0x49   : > { %2216 = shalt.err (!%p2213_p10)
}
  0x4a   : > { %2019 = dma.hbm_to_vmem [thread:$0]  (!%p2616_p6), %s3055_s8, 1024, %s2620_s22, [#allocation9], %s2474_s18, %s2474_s18, %s2475_s15  }
  0x4b   : > { %s2217_s25 = scalar_lea.hbm %s3059_s12, 1024 }
  0x4c   : > { %p2218_p11 = scmp.ne.s32.totalorder %s3059_s12, %s2217_s25  ;;  %p2224_p0 = scmp.lt.u32.totalorder %s2217_s25, %s3059_s12 }
  0x4e   : > { %p2220_p12 = pnand %p2218_p11, %p2632_p8 }
  0x50   : > { %p2221_p13 = pneg %p2220_p12 }
  0x52   : > { %p2226_p2 = pnand %p2224_p0, %p2221_p13 }
  0x54   : > { %2229 = shalt.err (!%p2226_p2)
}
  0x55   : > { %s2230_s22 = scalar_lea.vmem %s2622_s24, 1024  ;;  %p2238_p4 = scmp.lt.s32.totalorder %s2622_s24, %s2622_s24 }
  0x56   : > { %p2231_p5 = scmp.ne.s32.totalorder %s2622_s24, %s2230_s22  ;;  %p2239_p10 = scmp.lt.s32.totalorder %s2230_s22, %s2230_s22 }
  0x58   : > { %p2233_p7 = pnand %p2231_p5, %p2632_p8  ;;  %p2240_p11 = por %p2239_p10, %p2238_p4 }
  0x5a   : > { %p2234_p9 = pneg %p2233_p7 }
  0x5c   : > { %p2241_p12 = pnand %p2240_p11, %p2234_p9 }
  0x5e   : > { %2244 = shalt.err (!%p2241_p12)
}
  0x5f   : > { %2025 = dma.hbm_to_vmem [thread:$0]  (!%p2616_p6), %s3059_s12, 1024, %s2622_s24, [#allocation12], %s2474_s18, %s2474_s18, %s2475_s15  }
  0x60   : > { %s2476_s9 = smov [#allocation7]   ;;  %s2477_s13 = smov [#allocation10]  }
  0x61   : > { %s489_s11 = sshll.u32 %s2476_s9, 4  ;;  %s521_s25 = sshll.u32 %s2477_s13, 4  ;;  %s490_s11 = int_to_ptr.vmem [resolvable:$true] %s489_s11  ;;  %s522_s25 = int_to_ptr.vmem [resolvable:$true] %s521_s25 }
  0x62   : > { %s2245_s23 = scalar_lea.hbm %s3053_s6, 1024 }
  0x63   : > { %p2246_p13 = scmp.ne.s32.totalorder %s3053_s6, %s2245_s23  ;;  %p2252_p5 = scmp.lt.u32.totalorder %s2245_s23, %s3053_s6 }
  0x65   : > { %p2248_p0 = pnand %p2246_p13, %p2632_p8 }
  0x67   : > { %p2249_p2 = pneg %p2248_p0 }
  0x69   : > { %p2254_p7 = pnand %p2252_p5, %p2249_p2 }
  0x6b   : > { %2257 = shalt.err (!%p2254_p7)
}
  0x6c   : > { %s2258_s24 = scalar_lea.vmem %s490_s11, 1024  ;;  %p2266_p11 = scmp.lt.s32.totalorder %s490_s11, %s490_s11 }
  0x6d   : > { %p2259_p9 = scmp.ne.s32.totalorder %s490_s11, %s2258_s24  ;;  %p2267_p12 = scmp.lt.s32.totalorder %s2258_s24, %s2258_s24 }
  0x6f   : > { %p2261_p4 = pnand %p2259_p9, %p2632_p8  ;;  %p2268_p1 = por %p2267_p12, %p2266_p11 }
  0x71   : > { %p2262_p10 = pneg %p2261_p4 }
  0x73   : > { %p2269_p3 = pnand %p2268_p1, %p2262_p10 }
  0x75   : > { %2272 = shalt.err (!%p2269_p3)
}
  0x76   : > { %2016 = dma.hbm_to_vmem [thread:$0]  (!%p2616_p6), %s3053_s6, 1024, %s490_s11, [#allocation6], %s2474_s18, %s2474_s18, %s2475_s15  }
  0x77   : > { %s2273_s26 = scalar_lea.hbm %s3057_s10, 1024 }
  0x78   : > { %p2274_p1 = scmp.ne.s32.totalorder %s3057_s10, %s2273_s26  ;;  %p2280_p0 = scmp.lt.u32.totalorder %s2273_s26, %s3057_s10 }
  0x7a   : > { %p2276_p3 = pnand %p2274_p1, %p2632_p8 }
  0x7c   : > { %p2277_p13 = pneg %p2276_p3 }
  0x7e   : > { %p2282_p2 = pnand %p2280_p0, %p2277_p13 }
  0x80   : > { %2285 = shalt.err (!%p2282_p2)
}
  0x81   : > { %s2286_s19 = scalar_lea.vmem %s522_s25, 1024  ;;  %p2294_p4 = scmp.lt.s32.totalorder %s522_s25, %s522_s25 }
  0x82   : > { %p2287_p5 = scmp.ne.s32.totalorder %s522_s25, %s2286_s19  ;;  %p2295_p10 = scmp.lt.s32.totalorder %s2286_s19, %s2286_s19 }
  0x84   : > { %p2289_p7 = pnand %p2287_p5, %p2632_p8  ;;  %p2296_p11 = por %p2295_p10, %p2294_p4 }
  0x86   : > { %p2290_p9 = pneg %p2289_p7 }
  0x88   : > { %p2297_p12 = pnand %p2296_p11, %p2290_p9 }
  0x8a   : > { %2300 = shalt.err (!%p2297_p12)
}
  0x8b   : > { %2022 = dma.hbm_to_vmem [thread:$0]  (!%p2616_p6), %s3057_s10, 1024, %s522_s25, [#allocation9], %s2474_s18, %s2474_s18, %s2475_s15  }
  0x8c   : > { %s2478_s4 = smov [#allocation13]   ;;  %s2479_s9 = smov [#allocation14]  }
  0x8d   : > { %s553_s7 = sshll.u32 %s2478_s4, 4  ;;  %s569_s13 = sshll.u32 %s2479_s9, 4  ;;  %s554_s7 = int_to_ptr.vmem [resolvable:$true] %s553_s7  ;;  %s570_s13 = int_to_ptr.vmem [resolvable:$true] %s569_s13 }
  0x8e   : > { %s2301_s23 = scalar_lea.hbm %s3061_s14, 1024 }
  0x8f   : > { %p2302_p1 = scmp.ne.s32.totalorder %s3061_s14, %s2301_s23  ;;  %p2308_p0 = scmp.lt.u32.totalorder %s2301_s23, %s3061_s14 }
  0x91   : > { %p2304_p3 = pnand %p2302_p1, %p2632_p8 }
  0x93   : > { %p2305_p13 = pneg %p2304_p3 }
  0x95   : > { %p2310_p2 = pnand %p2308_p0, %p2305_p13 }
  0x97   : > { %2313 = shalt.err (!%p2310_p2)
}
  0x98   : > { %s2314_s25 = scalar_lea.vmem %s554_s7, 1024  ;;  %p2322_p4 = scmp.lt.s32.totalorder %s554_s7, %s554_s7 }
  0x99   : > { %p2315_p5 = scmp.ne.s32.totalorder %s554_s7, %s2314_s25  ;;  %p2323_p10 = scmp.lt.s32.totalorder %s2314_s25, %s2314_s25 }
  0x9b   : > { %p2317_p7 = pnand %p2315_p5, %p2632_p8  ;;  %p2324_p11 = por %p2323_p10, %p2322_p4 }
  0x9d   : > { %p2318_p9 = pneg %p2317_p7 }
  0x9f   : > { %p2325_p12 = pnand %p2324_p11, %p2318_p9 }
  0xa1   : > { %2328 = shalt.err (!%p2325_p12)
}
  0xa2   : > { %2028 = dma.hbm_to_vmem [thread:$0]  (!%p2616_p6), %s3061_s14, 1024, %s554_s7, [#allocation12], %s2474_s18, %s2474_s18, %s2475_s15  }
  0xa3   : > { %s2329_s0 = scalar_lea.hbm %s3063_s16, 1024 }
  0xa4   : > { %p2330_p1 = scmp.ne.s32.totalorder %s3063_s16, %s2329_s0  ;;  %p2336_p0 = scmp.lt.u32.totalorder %s2329_s0, %s3063_s16 }
  0xa6   : > { %p2332_p3 = pnand %p2330_p1, %p2632_p8 }
  0xa8   : > { %p2333_p13 = pneg %p2332_p3 }
  0xaa   : > { %p2338_p2 = pnand %p2336_p0, %p2333_p13 }
  0xac   : > { %2341 = shalt.err (!%p2338_p2)
}
  0xad   : > { %s2342_s11 = scalar_lea.vmem %s570_s13, 1024  ;;  %p2350_p4 = scmp.lt.s32.totalorder %s570_s13, %s570_s13 }
  0xae   : > { %p2343_p5 = scmp.ne.s32.totalorder %s570_s13, %s2342_s11  ;;  %p2351_p10 = scmp.lt.s32.totalorder %s2342_s11, %s2342_s11 }
  0xb0   : > { %p2345_p7 = pnand %p2343_p5, %p2632_p8  ;;  %p2352_p11 = por %p2351_p10, %p2350_p4 }
  0xb2   : > { %p2346_p9 = pneg %p2345_p7 }
  0xb4   : > { %p2353_p12 = pnand %p2352_p11, %p2346_p9 }
  0xb6   : > { %2356 = shalt.err (!%p2353_p12)
}
  0xb7   : > { %2031 = dma.hbm_to_vmem [thread:$0]  (!%p2616_p6), %s3063_s16, 1024, %s570_s13, [#allocation15], %s2474_s18, %s2474_s18, %s2475_s15  }
  0xb8   : > { %s1682_s2 = sadd.s32 4294967294, %s2469_s30   ;;  %s2794_s21 = sadd.s32 1, %s2469_s30  }
  0xb9   : > { %s45_s24 = sadd.s32 1, %s2465_s29  ;;  %s42_s4 = ssub.s32 %s2469_s30, %s2794_s21 }
  0xba   : > { %p52_p8 = scmp.ne.s32.totalorder %s2465_s29, %s2461_s28  ;;  %p43_p1 = scmp.eq.s32.totalorder %s42_s4, 0 }
  0xbb   : > { %p53_p3 = scmp.eq.s32.totalorder %s2469_s30, 0  ;;  %p58_p13 = scmp.ne.s32.totalorder %s2461_s28, %s2457_s27 }
  0xbc   : > { %p439_p0 = scmp.eq.s32.totalorder %s2600_s1, 1  ;;  %p3086_p5 = scmp.eq.s32.totalorder %s2600_s1, 0 }
  0xbd   : > { %s2806_s9 = scalar_select %p43_p1, %s2465_s29, %s45_s24  }
  0xbe   : > { %p54_p2 = por %p53_p3, %p52_p8  ;;  %p2810_p7 = por %p3086_p5, %p58_p13 }
  0xbf   : > { %p2814_p6 = por %p439_p0, %p52_p8  ;;  %p445_p9 = scmp.eq.s32.totalorder %s1682_s2, 1 }
  0xc0   : > { %p2047_p4 = scmp.lt.s32.totalorder %s2469_s30, 2  ;;  %s586_s15 = sand.u32 1, %s2465_s29  }
  0xc1   : > { %s3088_s18 = scalar_select %p2814_p6, 1, 0 }
  0xc2   : > { %p2820_p10 = por %p445_p9, %p58_p13  ;;  %s1692_s0 = sshll.u32 %s586_s15, 3 }
  0xc3   : > { %s1693_s23 = sshll.u32 %s2469_s30, 7  ;;  %s3090_s19 = sld [smem:[#allocation23_spill]] }
  0xc4   : > { %s3089_s13 = scalar_select %p2820_p10, 1, 0 }
  0xc5   : > { %s590_s7 = scalar_lea.vmem [#allocation2], %s1692_s0  ;;  %p2830_p11 = pnand %p2047_p4, %p54_p2 }
  0xc6   : > { %s597_s25 = sshll.u32 %s590_s7, 4  ;;  %s587_s24 = scalar_lea.sflag [#allocation3], %s586_s15  ;;  %s2834_s25 = int_to_ptr.vmem [resolvable:$true] %s597_s25 }
  0xc7   : > { %p2359_p8 = pneg %p2830_p11 }
  0xc9   : > { %s2828_s11 = scalar_lea.hbm %s3090_s19, %s1693_s23  ;;  %s2362_s17 = scalar_lea.hbm %s3090_s19, 256 }
  0xca   : > { %s2357_s4 = scalar_lea.hbm %s2828_s11, 128  ;;  %p2363_p13 = scmp.lt.u32.totalorder %s2828_s11, %s3090_s19 }
  0xcb   : > { %p2358_p12 = scmp.ne.s32.totalorder %s2828_s11, %s2357_s4  ;;  %p2364_p0 = scmp.lt.u32.totalorder %s2362_s17, %s2357_s4 }
  0xcc   : > { %p2366_p5 = scmp.lt.u32.totalorder %s2357_s4, %s2828_s11 }
  0xcd   : > { %p2360_p1 = pnand %p2359_p8, %p2358_p12  ;;  %p2365_p2 = por %p2364_p0, %p2363_p13 }
  0xcf   : > { %p2361_p3 = pneg %p2360_p1  ;;  %p2367_p9 = por %p2366_p5, %p2365_p2 }
  0xd1   : > { %p2368_p4 = pnand %p2367_p9, %p2361_p3 }
  0xd3   : > { %2371 = shalt.err (!%p2368_p4)
}
  0xd4   : > { %s2372_s15 = scalar_lea.vmem %s2834_s25, 128  ;;  %s2480_s23 = smov [#allocation2]  }
  0xd5   : > { %p2373_p12 = scmp.ne.s32.totalorder %s2834_s25, %s2372_s15  ;;  %s2377_s0 = sshll.u32 %s2480_s23, 4  ;;  %s2378_s0 = int_to_ptr.vmem [resolvable:$false] %s2377_s0 }
  0xd6   : > { %s2379_s22 = scalar_lea.vmem %s2378_s0, 256  ;;  %p2380_p6 = scmp.lt.s32.totalorder %s2834_s25, %s2378_s0 }
  0xd7   : > { %p2375_p1 = pnand %p2373_p12, %p2359_p8  ;;  %p2381_p13 = scmp.lt.s32.totalorder %s2379_s22, %s2372_s15 }
  0xd9   : > { %p2376_p10 = pneg %p2375_p1  ;;  %p2382_p0 = por %p2381_p13, %p2380_p6 }
  0xdb   : > { %p2383_p2 = pnand %p2382_p0, %p2376_p10 }
  0xdd   : > { %2386 = shalt.err (!%p2383_p2)
}
  0xde   : > { %2035 = dma.hbm_to_vmem [thread:$0]  (!%p2830_p11), %s2828_s11, 128, %s2834_s25, %s587_s24  }
  0xdf   : > { %p3092_p3 = scmp.ne.s32.totalorder %s3082_s20, 0 }
  0xe0   : > { %s2864_s4 = sand.u32 (!%p3092_p3), 1, %s2461_s28  }
  0xe1   : > { %606 = sbr.rel (%p3092_p3) target bundleno = 2131 (0x853), region = 92  ;;  %s1695_s17 = sshll.u32 (!%p3092_p3), %s2864_s4, 3 }
  0xe2   : > { %s609_s7 = scalar_lea.sflag (!%p3092_p3), [#allocation3], %s2864_s4  ;;  %s612_s15 = scalar_lea.vmem (!%p3092_p3), [#allocation2], %s1695_s17 }
  0xe8   : > { %2432 = dma.done.wait (%p2810_p7), %s609_s7, 128  }
  0xe9   : > { %2434 = vsyncadd (%p2810_p7), %s609_s7, 4294967168  ;;  %p3093_p6 = scmp.eq.s32.totalorder %s2600_s1, 0 }
  0xeb   : > { %2436 = dma.done.wait (%p3093_p6), [#allocation6], 2048   ;;  %p3094_p10 = pmov %p3093_p6 }
  0xec   : > { %p3095_p11 = pmov %p3093_p6 }
  0xed   : > { %2438 = vsyncadd (%p3094_p10), [#allocation6], 4294965248 }
  0xee   : > { %2440 = dma.done.wait (%p3095_p11), [#allocation9], 2048   ;;  %p3096_p8 = pmov %p3093_p6 }
  0xef   : > { %p3097_p5 = pmov %p3093_p6 }
  0xf0   : > { %2442 = vsyncadd (%p3096_p8), [#allocation9], 4294965248 }
  0xf1   : > { %2444 = dma.done.wait (%p3097_p5), [#allocation12], 2048   ;;  %p3098_p9 = pmov %p3097_p5 }
  0xf2   : > { %p3099_p7 = pmov %p3097_p5 }
  0xf3   : > { %2446 = vsyncadd (%p3098_p9), [#allocation12], 4294965248 }
  0xf4   : > { %2448 = dma.done.wait (%p3099_p7), [#allocation15], 1024   ;;  %p3100_p4 = pmov %p3097_p5 }
  0xf5   : > { %v694_v0 = vld [vmem:[%s612_s15] sm:$0xff]  ;;  %v2099_v1 = vld [vmem:[#allocation5] sm:$0xff]   ;;  %v2100_v2 = vld [vmem:[#allocation5 + $0x8] sm:$0xff]   ;;  %v2481_v3 = vmov 0.0   ;;  %vm2482_vm0 = vmmov 0   ;;  %s3101_s2 = sld [smem:[#allocation24_spill]] }
  0xf6   : > { %2450 = vsyncadd (%p3100_p4), [#allocation15], 4294966272  ;;  %695 = vadd.xlane.f32.xlu0 %v694_v0  ;;  %1838 = vmatprep.subr.bf16.mxu0 %v2481_v3  ;;  %v1704_v6 = vld [vmem:[%s3050_s3] ss:$0 sm:$0xff]  ;;  %v2102_v11 = vld [vmem:[#allocation5 + $0x18] sm:$0xff]   ;;  %s3102_s0 = sld [smem:[#allocation25_spill]] }
  0xf7   : > { %1858 = vmatprep.subr.bf16.mxu1 %v2481_v3  ;;  %1839 = vmatpush3.bf16.msra.mxu0 %v2099_v1  ;;  %v2101_v10 = vld [vmem:[#allocation5 + $0x10] sm:$0xff]   ;;  %v2103_v12 = vld [vmem:[#allocation5 + $0x20] sm:$0xff]   ;;  %v2104_v13 = vld [vmem:[#allocation5 + $0x28] sm:$0xff]   ;;  %s3103_s20 = sld [smem:[#allocation27_spill]]  ;;  %s3104_s25 = sld [smem:[#allocation28_spill]] }
  0xf8   : > { %1840 = vmatprep.subr.bf16.mxu0 %v2481_v3  ;;  %1854 = vmatprep.mubr.msk.bf16.mxu0 %vm2482_vm0, %v2481_v3  ;;  %v2105_v14 = vld [vmem:[#allocation5 + $0x30] sm:$0xff]   ;;  %v2106_v15 = vld [vmem:[#allocation5 + $0x38] sm:$0xff]   ;;  %v2107_v16 = vld [vmem:[#allocation7] sm:$0xff]   ;;  %s3105_s23 = sld [smem:[#allocation29_spill]]  ;;  %s3106_s17 = sld [smem:[#allocation30_spill]] }
  0xf9   : > { %1874 = vmatprep.mubr.msk.bf16.mxu1 %vm2482_vm0, %v2481_v3  ;;  %1859 = vmatpush3.bf16.msra.mxu1 %v2107_v16  ;;  %v2108_v17 = vld [vmem:[#allocation7 + $0x8] sm:$0xff]   ;;  %v2109_v18 = vld [vmem:[#allocation7 + $0x10] sm:$0xff]   ;;  %v2110_v19 = vld [vmem:[#allocation7 + $0x18] sm:$0xff]   ;;  %s1772_s24 = sshll.u32 %s2600_s1, 6  ;;  %s3109_s7 = sld [smem:[#allocation33_spill]] }
  0xfa   : > { %1860 = vmatprep.subr.bf16.mxu1 %v2481_v3  ;;  %v2111_v20 = vld [vmem:[#allocation7 + $0x20] sm:$0xff]   ;;  %v2112_v21 = vld [vmem:[#allocation7 + $0x28] sm:$0xff]   ;;  %v2113_v32 = vld [vmem:[#allocation7 + $0x30] sm:$0xff]   ;;  %p3110_p1 = scmp.ne.s32.totalorder %s3088_s18, 0  ;;  %s2483_s1 = smov [#allocation16]  }
  0xfb   : > { %1841 = vmatpush3.bf16.msra.mxu0 %v2100_v2  ;;  %v1705_v26 = vld [vmem:[%s3101_s2] ss:$0 sm:$0xff]  ;;  %v2114_v33 = vld [vmem:[#allocation7 + $0x38] sm:$0xff]   ;;  %v2115_v34 = vld [vmem:[#allocation8] sm:$0xff]   ;;  %s1703_s2 = sshll.u32 %s2864_s4, 2  ;;  %s2391_s11 = sshll.u32 %s2483_s1, 4  ;;  %s2392_s11 = int_to_ptr.vmem [resolvable:$false] %s2391_s11 }
  0xfc   : > { %1842 = vmatprep.subr.bf16.mxu0 %v2481_v3  ;;  %v1706_v28 = vld [vmem:[%s3102_s0] ss:$0 sm:$0xff]  ;;  %v2116_v35 = vld [vmem:[#allocation8 + $0x8] sm:$0xff]   ;;  %v2118_v37 = vld [vmem:[#allocation8 + $0x18] sm:$0xff]  }
  0xfd   : > { %1861 = vmatpush3.bf16.msra.mxu1 %v2108_v17  ;;  %v2117_v36 = vld [vmem:[#allocation8 + $0x10] sm:$0xff]   ;;  %v2119_v38 = vld [vmem:[#allocation8 + $0x20] sm:$0xff]   ;;  %v2120_v39 = vld [vmem:[#allocation8 + $0x28] sm:$0xff]  }
  0xfe   : > { %1862 = vmatprep.subr.bf16.mxu1 %v2481_v3  ;;  %v1707_v40 = vld [vmem:[%s3052_s5] ss:$0 sm:$0xff]  ;;  %v2122_v49 = vld [vmem:[#allocation8 + $0x38] sm:$0xff]   ;;  %v2123_v50 = vld [vmem:[#allocation10] sm:$0xff]  }
  0xff   : > { %1843 = vmatpush3.bf16.msra.mxu0 %v2101_v10  ;;  %v2121_v48 = vld [vmem:[#allocation8 + $0x30] sm:$0xff]   ;;  %v2124_v51 = vld [vmem:[#allocation10 + $0x8] sm:$0xff]   ;;  %v2126_v53 = vld [vmem:[#allocation10 + $0x18] sm:$0xff]   ;;  %s3003_s15 = scalar_lea.hbm %s3109_s7, %s1772_s24 }
 0x100   : > { %1844 = vmatprep.subr.bf16.mxu0 %v2481_v3  ;;  %v2125_v52 = vld [vmem:[#allocation10 + $0x10] sm:$0xff]   ;;  %v2127_v54 = vld [vmem:[#allocation10 + $0x20] sm:$0xff]   ;;  %v2128_v55 = vld [vmem:[#allocation10 + $0x28] sm:$0xff]  }
 0x101   : > { %1863 = vmatpush3.bf16.msra.mxu1 %v2109_v18  ;;  %v1716_v56 = vld [vmem:[%s3103_s20] ss:$0 sm:$0xff]  ;;  %v2130_v2 = vld [vmem:[#allocation10 + $0x38] sm:$0xff]   ;;  %s3107_s20 = sld [smem:[#allocation31_spill]] }
 0x102   : > { %1864 = vmatprep.subr.bf16.mxu1 %v2481_v3  ;;  %v2129_v1 = vld [vmem:[#allocation10 + $0x30] sm:$0xff]  }
 0x103   : > { %1845 = vmatpush3.bf16.msra.mxu0 %v2102_v11  ;;  %v1725_v10 = vld [vmem:[%s3104_s25] ss:$0 sm:$0xff]  ;;  %s3108_s25 = sld [smem:[#allocation32_spill]] }
 0x104   : > { %1846 = vmatprep.subr.bf16.mxu0 %v2481_v3  ;;  %v2137_v18 = vld [vmem:[#allocation11 + $0x30] sm:$0xff]  }
 0x105   : > { %1865 = vmatpush3.bf16.msra.mxu1 %v2110_v19  ;;  %v2138_v19 = vld [vmem:[#allocation11 + $0x38] sm:$0xff]  }
 0x106   : > { %1866 = vmatprep.subr.bf16.mxu1 %v2481_v3 }
 0x107   : > { %1847 = vmatpush3.bf16.msra.mxu0 %v2103_v12 }
 0x108   : > { %1848 = vmatprep.subr.bf16.mxu0 %v2481_v3 }
 0x109   : > { %1867 = vmatpush3.bf16.msra.mxu1 %v2111_v20  ;;  %v2139_v20 = vld [vmem:[#allocation13] sm:$0xff]  }
 0x10a   : > { %1868 = vmatprep.subr.bf16.mxu1 %v2481_v3 }
 0x10b   : > { %1849 = vmatpush3.bf16.msra.mxu0 %v2104_v13 }
 0x10c   : > { %1850 = vmatprep.subr.bf16.mxu0 %v2481_v3 }
 0x10d   : > { %1869 = vmatpush3.bf16.msra.mxu1 %v2112_v21  ;;  %v2140_v21 = vld [vmem:[#allocation13 + $0x8] sm:$0xff]  }
 0x10e   : > { %1870 = vmatprep.subr.bf16.mxu1 %v2481_v3 }
 0x10f   : > { %1851 = vmatpush3.bf16.msra.mxu0 %v2105_v14 }
 0x110   : > { %1852 = vmatprep.subr.bf16.mxu0 %v2481_v3 }
 0x111   : > { %1871 = vmatpush3.bf16.msra.mxu1 %v2113_v32 }
 0x112   : > { %1872 = vmatprep.subr.bf16.mxu1 %v2481_v3 }
 0x113   : > { %1853 = vmatpush3.bf16.msra.mxu0 %v2106_v15 }
 0x114   : > { %1878 = vmatprep.subr.bf16.mxu0 %v2481_v3 }
 0x115   : > { %1873 = vmatpush3.bf16.msra.mxu1 %v2114_v33 }
 0x116   : > { %1898 = vmatprep.subr.bf16.mxu1 %v2481_v3 }
 0x183   : > { %v696_v4 = vpop.xlane.xlu0 %695 }
 0x184   : > { %v697_v5 = vmul.f32 0.03125, %v696_v4  ;;  %v2131_v4 = vld [vmem:[#allocation11] sm:$0xff]  }
 0x186   : > { %v698_v7 = vsub.f32 %v694_v0, %v697_v5  ;;  %v2132_v5 = vld [vmem:[#allocation11 + $0x8] sm:$0xff]  }
 0x188   : > { %v706_v8 = vmul.f32 %v1704_v6, %v698_v7  ;;  %v2133_v6 = vld [vmem:[#allocation11 + $0x10] sm:$0xff]  }
 0x18a   : > { %v707_v9 = vmul.f32 %v706_v8, %v706_v8  ;;  %v2135_v8 = vld [vmem:[#allocation11 + $0x20] sm:$0xff]  }
 0x18c   : > { %708 = vadd.xlane.f32.xlu0 %v707_v9  ;;  %v2136_v9 = vld [vmem:[#allocation11 + $0x28] sm:$0xff]  }
 0x219   : > { %v709_v22 = vpop.xlane.xlu0 %708 }
 0x21a   : > { %v710_v23 = vmul.f32 0.03125, %v709_v22  ;;  %v2141_v22 = vld [vmem:[#allocation13 + $0x10] sm:$0xff]  }
 0x21c   : > { %v711_v24 = vadd.f32 1e-05, %v710_v23  ;;  %v2142_v23 = vld [vmem:[#allocation13 + $0x18] sm:$0xff]  }
 0x21e   : > { %2155 = vrsqrt.f32 %v711_v24  ;;  %v2143_v24 = vld [vmem:[#allocation13 + $0x20] sm:$0xff]  }
 0x228   : > { %v2156_v25 = vpop.eup %2155 }
 0x229   : > { %v713_v27 = vmul.f32 %v2156_v25, %v698_v7  ;;  %v2134_v7 = vld [vmem:[#allocation11 + $0x18] sm:$0xff]   ;;  %v2144_v25 = vld [vmem:[#allocation13 + $0x28] sm:$0xff]  }
 0x22b   : > { %v721_v29 = vmul.f32 %v1705_v26, %v713_v27  ;;  %v1734_v26 = vld [vmem:[%s3105_s23] ss:$0 sm:$0xff]  ;;  %s692_s23 = scalar_lea.vmem [#allocation16], %s1703_s2 }
 0x22c   : > { %s1545_s0 = sshll.u32 %s692_s23, 4  ;;  %s3005_s0 = int_to_ptr.vmem [resolvable:$true] %s1545_s0 }
 0x22d   : > { %v2917_v30 = vadd.f32 %v1706_v28, %v721_v29  ;;  %s2387_s26 = scalar_lea.vmem %s3005_s0, 64  ;;  %p2394_p2 = scmp.lt.s32.totalorder %s3005_s0, %s2392_s11 }
 0x22e   : > { %p2388_p12 = scmp.ne.s32.totalorder %s3005_s0, %s2387_s26 }
 0x22f   : > { %v730_v31 = vpack.c.bf16 %v2917_v30, %v2917_v30 }
 0x230   : > { %p2389_p13 = pnand %p2388_p12, %p3110_p1 }
 0x231   : > { %1855 = vmatmul.mubr.bf16.vlgmr.msra.gmra.mrb[0].mxu0 %v730_v31 }
 0x232   : > { %1894 = vmatprep.mubr.msk.bf16.mxu0 %vm2482_vm0, %v2481_v3  ;;  %1879 = vmatpush3.bf16.msra.mxu0 %v2115_v34  ;;  %p2390_p0 = pneg %p2389_p13 }
 0x233   : > { %1880 = vmatprep.subr.bf16.mxu0 %v2481_v3 }
 0x236   : > { %1881 = vmatpush3.bf16.msra.mxu0 %v2116_v35  ;;  %v2145_v35 = vld [vmem:[#allocation13 + $0x30] sm:$0xff]  }
 0x237   : > { %1882 = vmatprep.subr.bf16.mxu0 %v2481_v3 }
 0x23a   : > { %1883 = vmatpush3.bf16.msra.mxu0 %v2117_v36  ;;  %v2146_v36 = vld [vmem:[#allocation13 + $0x38] sm:$0xff]  }
 0x23b   : > { %1884 = vmatprep.subr.bf16.mxu0 %v2481_v3 }
 0x23e   : > { %1885 = vmatpush3.bf16.msra.mxu0 %v2118_v37  ;;  %v2147_v37 = vld [vmem:[#allocation14] sm:$0xff]  }
 0x23f   : > { %1886 = vmatprep.subr.bf16.mxu0 %v2481_v3 }
 0x242   : > { %1887 = vmatpush3.bf16.msra.mxu0 %v2119_v38  ;;  %v2148_v38 = vld [vmem:[#allocation14 + $0x8] sm:$0xff]  }
 0x243   : > { %1888 = vmatprep.subr.bf16.mxu0 %v2481_v3 }
 0x246   : > { %1889 = vmatpush3.bf16.msra.mxu0 %v2120_v39  ;;  %v2149_v39 = vld [vmem:[#allocation14 + $0x10] sm:$0xff]  }
 0x247   : > { %1890 = vmatprep.subr.bf16.mxu0 %v2481_v3 }
 0x24a   : > { %1891 = vmatpush3.bf16.msra.mxu0 %v2121_v48 }
 0x24b   : > { %1892 = vmatprep.subr.bf16.mxu0 %v2481_v3 }
 0x24e   : > { %1893 = vmatpush3.bf16.msra.mxu0 %v2122_v49 }
 0x24f   : > { %1918 = vmatprep.subr.bf16.mxu0 %v2481_v3 }
 0x304   : > { %v836_v41 = vpop.f32.mrb[0].mxu0 }
 0x305   : > { %v837_v42 = vadd.f32 %v1707_v40, %v836_v41  ;;  %v1856_v43 = vpop.f32.mrb[1].mxu0  ;;  %v2150_v40 = vld [vmem:[#allocation14 + $0x18] sm:$0xff]   ;;  %v2151_v41 = vld [vmem:[#allocation14 + $0x20] sm:$0xff]  }
 0x306   : > { %v839_v44 = vpop.f32.mrb[2].mxu0  ;;  %v1743_v43 = vld [vmem:[%s3106_s17] ss:$0 sm:$0xff] }
 0x307   : > { %v842_v45 = vmax.f32 %v837_v42, 0.0  ;;  %v1857_v46 = vpop.f32.mrb[3].mxu0  ;;  %v2152_v42 = vld [vmem:[#allocation14 + $0x28] sm:$0xff]  }
 0x309   : > { %v843_v47 = vpack.c.bf16 %v842_v45, %v842_v45 }
 0x30b   : > { %1875 = vmatmul.mubr.bf16.vlgmr.msra.gmra.mrb[0].mxu1 %v843_v47 }
 0x30c   : > { %1914 = vmatprep.mubr.msk.bf16.mxu1 %vm2482_vm0, %v2481_v3  ;;  %1899 = vmatpush3.bf16.msra.mxu1 %v2123_v50 }
 0x30d   : > { %1900 = vmatprep.subr.bf16.mxu1 %v2481_v3 }
 0x310   : > { %1901 = vmatpush3.bf16.msra.mxu1 %v2124_v51  ;;  %v2153_v51 = vld [vmem:[#allocation14 + $0x30] sm:$0xff]  }
 0x311   : > { %1902 = vmatprep.subr.bf16.mxu1 %v2481_v3 }
 0x314   : > { %1903 = vmatpush3.bf16.msra.mxu1 %v2125_v52  ;;  %v2154_v52 = vld [vmem:[#allocation14 + $0x38] sm:$0xff]  }
 0x315   : > { %1904 = vmatprep.subr.bf16.mxu1 %v2481_v3 }
 0x318   : > { %1905 = vmatpush3.bf16.msra.mxu1 %v2126_v53  ;;  %v1752_v53 = vld [vmem:[%s3107_s20] ss:$0 sm:$0xff]  ;;  %s1532_s20 = scalar_lea.sflag [#allocation4], %s2864_s4 }
 0x319   : > { %1906 = vmatprep.subr.bf16.mxu1 %v2481_v3 }
 0x31c   : > { %1907 = vmatpush3.bf16.msra.mxu1 %v2127_v54 }
 0x31d   : > { %1908 = vmatprep.subr.bf16.mxu1 %v2481_v3 }
 0x320   : > { %1909 = vmatpush3.bf16.msra.mxu1 %v2128_v55 }
 0x321   : > { %1910 = vmatprep.subr.bf16.mxu1 %v2481_v3 }
 0x324   : > { %1911 = vmatpush3.bf16.msra.mxu1 %v2129_v1 }
 0x325   : > { %1912 = vmatprep.subr.bf16.mxu1 %v2481_v3 }
 0x328   : > { %1913 = vmatpush3.bf16.msra.mxu1 %v2130_v2 }
 0x329   : > { %1938 = vmatprep.subr.bf16.mxu1 %v2481_v3 }
 0x3de   : > { %v949_v57 = vpop.f32.mrb[0].mxu1 }
 0x3df   : > { %v950_v58 = vadd.f32 %v1716_v56, %v949_v57  ;;  %v1876_v59 = vpop.f32.mrb[1].mxu1 }
 0x3e0   : > { %v952_v60 = vpop.f32.mrb[2].mxu1 }
 0x3e1   : > { %v955_v61 = vmax.f32 %v950_v58, 0.0  ;;  %v1877_v62 = vpop.f32.mrb[3].mxu1 }
 0x3e3   : > { %v2948_v63 = vadd.f32 %v955_v61, %v2917_v30 }
 0x3e5   : > { %v957_v0 = vpack.c.bf16 %v2948_v63, %v2948_v63 }
 0x3e7   : > { %1895 = vmatmul.mubr.bf16.vlgmr.msra.gmra.mrb[4].mxu0 %v957_v0 }
 0x3e8   : > { %1934 = vmatprep.mubr.msk.bf16.mxu0 %vm2482_vm0, %v2481_v3  ;;  %1919 = vmatpush3.bf16.msra.mxu0 %v2131_v4 }
 0x3e9   : > { %1920 = vmatprep.subr.bf16.mxu0 %v2481_v3 }
 0x3ec   : > { %1921 = vmatpush3.bf16.msra.mxu0 %v2132_v5 }
 0x3ed   : > { %1922 = vmatprep.subr.bf16.mxu0 %v2481_v3 }
 0x3f0   : > { %1923 = vmatpush3.bf16.msra.mxu0 %v2133_v6 }
 0x3f1   : > { %1924 = vmatprep.subr.bf16.mxu0 %v2481_v3 }
 0x3f4   : > { %1925 = vmatpush3.bf16.msra.mxu0 %v2134_v7 }
 0x3f5   : > { %1926 = vmatprep.subr.bf16.mxu0 %v2481_v3 }
 0x3f8   : > { %1927 = vmatpush3.bf16.msra.mxu0 %v2135_v8 }
 0x3f9   : > { %1928 = vmatprep.subr.bf16.mxu0 %v2481_v3 }
 0x3fc   : > { %1929 = vmatpush3.bf16.msra.mxu0 %v2136_v9 }
 0x3fd   : > { %1930 = vmatprep.subr.bf16.mxu0 %v2481_v3 }
 0x400   : > { %1931 = vmatpush3.bf16.msra.mxu0 %v2137_v18 }
 0x401   : > { %1932 = vmatprep.subr.bf16.mxu0 %v2481_v3 }
 0x404   : > { %1933 = vmatpush3.bf16.msra.mxu0 %v2138_v19 }
 0x405   : > { %1958 = vmatprep.subr.bf16.mxu0 %v2481_v3 }
 0x4ba   : > { %v1063_v11 = vpop.f32.mrb[4].mxu0 }
 0x4bb   : > { %v1064_v12 = vadd.f32 %v1725_v10, %v1063_v11  ;;  %v1896_v13 = vpop.f32.mrb[5].mxu0 }
 0x4bc   : > { %v1066_v14 = vpop.f32.mrb[6].mxu0 }
 0x4bd   : > { %v1069_v15 = vmax.f32 %v1064_v12, 0.0  ;;  %v1897_v16 = vpop.f32.mrb[7].mxu0 }
 0x4bf   : > { %v1070_v17 = vpack.c.bf16 %v1069_v15, %v1069_v15 }
 0x4c1   : > { %1915 = vmatmul.mubr.bf16.vlgmr.msra.gmra.mrb[4].mxu1 %v1070_v17 }
 0x4c2   : > { %1954 = vmatprep.mubr.msk.bf16.mxu1 %vm2482_vm0, %v2481_v3  ;;  %1939 = vmatpush3.bf16.msra.mxu1 %v2139_v20 }
 0x4c3   : > { %1940 = vmatprep.subr.bf16.mxu1 %v2481_v3 }
 0x4c6   : > { %1941 = vmatpush3.bf16.msra.mxu1 %v2140_v21 }
 0x4c7   : > { %1942 = vmatprep.subr.bf16.mxu1 %v2481_v3 }
 0x4ca   : > { %1943 = vmatpush3.bf16.msra.mxu1 %v2141_v22 }
 0x4cb   : > { %1944 = vmatprep.subr.bf16.mxu1 %v2481_v3 }
 0x4ce   : > { %1945 = vmatpush3.bf16.msra.mxu1 %v2142_v23 }
 0x4cf   : > { %1946 = vmatprep.subr.bf16.mxu1 %v2481_v3 }
 0x4d2   : > { %1947 = vmatpush3.bf16.msra.mxu1 %v2143_v24 }
 0x4d3   : > { %1948 = vmatprep.subr.bf16.mxu1 %v2481_v3 }
 0x4d6   : > { %1949 = vmatpush3.bf16.msra.mxu1 %v2144_v25 }
 0x4d7   : > { %1950 = vmatprep.subr.bf16.mxu1 %v2481_v3 }
 0x4da   : > { %1951 = vmatpush3.bf16.msra.mxu1 %v2145_v35 }
 0x4db   : > { %1952 = vmatprep.subr.bf16.mxu1 %v2481_v3 }
 0x4de   : > { %1953 = vmatpush3.bf16.msra.mxu1 %v2146_v36 }
 0x594   : > { %v1176_v27 = vpop.f32.mrb[4].mxu1 }
 0x595   : > { %v1177_v28 = vadd.f32 %v1734_v26, %v1176_v27  ;;  %v1916_v29 = vpop.f32.mrb[5].mxu1 }
 0x596   : > { %v1179_v30 = vpop.f32.mrb[6].mxu1 }
 0x597   : > { %v1182_v31 = vmax.f32 %v1177_v28, 0.0  ;;  %v1917_v32 = vpop.f32.mrb[7].mxu1 }
 0x599   : > { %v1183_v33 = vadd.f32 %v1182_v31, %v2948_v63 }
 0x59b   : > { %v1184_v34 = vpack.c.bf16 %v1183_v33, %v1183_v33 }
 0x59d   : > { %1935 = vmatmul.mubr.bf16.vlgmr.msra.gmra.mrb[8].mxu0 %v1184_v34 }
 0x59e   : > { %1974 = vmatprep.mubr.msk.bf16.mxu0 %vm2482_vm0, %v2481_v3  ;;  %1959 = vmatpush3.bf16.msra.mxu0 %v2147_v37 }
 0x59f   : > { %1960 = vmatprep.subr.bf16.mxu0 %v2481_v3 }
 0x5a2   : > { %1961 = vmatpush3.bf16.msra.mxu0 %v2148_v38 }
 0x5a3   : > { %1962 = vmatprep.subr.bf16.mxu0 %v2481_v3 }
 0x5a6   : > { %1963 = vmatpush3.bf16.msra.mxu0 %v2149_v39 }
 0x5a7   : > { %1964 = vmatprep.subr.bf16.mxu0 %v2481_v3 }
 0x5aa   : > { %1965 = vmatpush3.bf16.msra.mxu0 %v2150_v40 }
 0x5ab   : > { %1966 = vmatprep.subr.bf16.mxu0 %v2481_v3 }
 0x5ae   : > { %1967 = vmatpush3.bf16.msra.mxu0 %v2151_v41 }
 0x5af   : > { %1968 = vmatprep.subr.bf16.mxu0 %v2481_v3 }
 0x5b2   : > { %1969 = vmatpush3.bf16.msra.mxu0 %v2152_v42 }
 0x5b3   : > { %1970 = vmatprep.subr.bf16.mxu0 %v2481_v3 }
 0x5b6   : > { %1971 = vmatpush3.bf16.msra.mxu0 %v2153_v51 }
 0x5b7   : > { %1972 = vmatprep.subr.bf16.mxu0 %v2481_v3  ;;  %v1761_v3 = vld [vmem:[%s3108_s25] ss:$0 sm:$0xff]  ;;  %s2393_s25 = scalar_lea.vmem %s2392_s11, 128 }
 0x5b8   : > { %p2395_p3 = scmp.lt.s32.totalorder %s2393_s25, %s2387_s26 }
 0x5ba   : > { %1973 = vmatpush3.bf16.msra.mxu0 %v2154_v52  ;;  %p2396_p6 = por %p2395_p3, %p2394_p2 }
 0x5bc   : > { %p2397_p10 = pnand %p2396_p6, %p2390_p0 }
 0x670   : > { %v1290_v44 = vpop.f32.mrb[8].mxu0 }
 0x671   : > { %v1291_v45 = vadd.f32 %v1743_v43, %v1290_v44  ;;  %v1936_v46 = vpop.f32.mrb[9].mxu0 }
 0x672   : > { %v1293_v47 = vpop.f32.mrb[10].mxu0 }
 0x673   : > { %v1296_v48 = vmax.f32 %v1291_v45, 0.0  ;;  %v1937_v49 = vpop.f32.mrb[11].mxu0 }
 0x675   : > { %v1297_v50 = vpack.c.bf16 %v1296_v48, %v1296_v48 }
 0x677   : > { %1955 = vmatmul.mubr.bf16.vlgmr.msra.gmra.mrb[8].mxu1 %v1297_v50 }
 0x74a   : > { %v1403_v54 = vpop.f32.mrb[8].mxu1 }
 0x74b   : > { %v1404_v55 = vadd.f32 %v1752_v53, %v1403_v54  ;;  %v1956_v56 = vpop.f32.mrb[9].mxu1 }
 0x74c   : > { %v1406_v57 = vpop.f32.mrb[10].mxu1 }
 0x74d   : > { %v1409_v58 = vmax.f32 %v1404_v55, 0.0  ;;  %v1957_v59 = vpop.f32.mrb[11].mxu1 }
 0x74f   : > { %v1410_v60 = vadd.f32 %v1409_v58, %v1183_v33 }
 0x751   : > { %v1411_v61 = vpack.c.bf16 %v1410_v60, %v1410_v60 }
 0x753   : > { %1975 = vmatmul.mubr.bf16.vlgmr.msra.gmra.mrb[12].mxu0 %v1411_v61 }
 0x826   : > { %v1517_v62 = vpop.f32.mrb[12].mxu0 }
 0x827   : > { %v1518_v63 = vadd.f32 %v1761_v3, %v1517_v62  ;;  %v1976_v0 = vpop.f32.mrb[13].mxu0 }
 0x828   : > { %v1520_v1 = vpop.f32.mrb[14].mxu0 }
 0x829   : > { %v1770_v2 = vmul.f32 -1.442695, %v1518_v63  ;;  %v1977_v4 = vpop.f32.mrb[15].mxu0 }
 0x82b   : > { %2157 = vpow2.f32 %v1770_v2 }
 0x835   : > { %v2158_v5 = vpop.eup %2157 }
 0x836   : > { %v1526_v6 = vadd.f32 1.0, %v2158_v5 }
 0x838   : > { %2159 = vrcp.f32 %v1526_v6 }
 0x842   : > { %v2160_v7 = vpop.eup %2159 }
 0x843   : > { %v1529_v8 = vpack.c.bf16 %v2160_v7, %v2160_v7 }
 0x845   : > { %1530 = vst [vmem:[%s692_s23] sm:$0xf] %v1529_v8 }
 0x846   : > { %2400 = shalt.err (!%p2397_p10)
}
 0x847   : > { %s2401_s4 = scalar_lea.hbm %s3003_s15, 64  ;;  %s2405_s23 = scalar_lea.hbm %s3109_s7, 128 }
 0x848   : > { %p2402_p11 = scmp.ne.s32.totalorder %s3003_s15, %s2401_s4  ;;  %p2406_p9 = scmp.lt.u32.totalorder %s3003_s15, %s3109_s7 }
 0x849   : > { %p2407_p7 = scmp.lt.u32.totalorder %s2405_s23, %s2401_s4  ;;  %p2409_p12 = scmp.lt.u32.totalorder %s2401_s4, %s3003_s15 }
 0x84a   : > { %p2403_p8 = pnand %p2402_p11, %p3110_p1 }
 0x84b   : > { %p2408_p4 = por %p2407_p7, %p2406_p9 }
 0x84c   : > { %p2404_p5 = pneg %p2403_p8 }
 0x84d   : > { %p2410_p13 = por %p2409_p12, %p2408_p4 }
 0x84f   : > { %p2411_p0 = pnand %p2410_p13, %p2404_p5 }
 0x851   : > { %2414 = shalt.err (!%p2411_p0)
}
 0x852   : > { %2008 = dma.vmem_to_hbm [thread:$0]  (%p3110_p1), %s3005_s0, 64, %s3003_s15, %s1532_s20  }
 0x853 PF: > { %s1557_s26 = sand.u32 1, %s2457_s27   ;;  %p3111_p2 = scmp.ne.s32.totalorder %s3089_s13, 0 }
 0x854   : > { %p3112_p3 = scmp.ge.s32.totalorder %s2469_s30, 2  ;;  %s1558_s1 = scalar_lea.sflag [#allocation4], %s1557_s26 }
 0x856   : > { %p2037_p6 = pnand %p3112_p3, %p3111_p2 }
 0x858   : > { %2452 = dma.done.wait (!%p2037_p6), %s1558_s1, 64  }
 0x859   : > { %2454 = vsyncadd (!%p2037_p6), %s1558_s1, 4294967232  ;;  %p35_p10 = scmp.ge.s32.totalorder %s2794_s21, 4   ;;  %s3113_s27 = smov %s2461_s28 }
 0x85a   : > { %s3114_s28 = smov %s2465_s29  ;;  %s3115_s29 = smov %s2806_s9 }
 0x85b   : > { %s3116_s30 = smov %s2794_s21  ;;  %37 = sbr.rel (!%p35_p10) target bundleno = 21 (0x15), region = 165 }
 0x862   :  { %1563 = vsyncpa [#allocation3], 1 }
 0x863   :  { %1565 = vsyncpa [#allocation3 + $0x1], 1 }
 0x864   :  { %1566 = vsyncpa [#allocation6], 1 }
 0x865   :  { %1567 = vsyncpa [#allocation9], 1 }
 0x866   :  { %1568 = vsyncpa [#allocation12], 1 }
 0x867   :  { %1569 = vsyncpa [#allocation15], 1 }
 0x868   :  { %1570 = vsyncpa [#allocation4], 1 }
 0x869   :  { %1572 = vsyncpa [#allocation4 + $0x1], 1 }

// kernel: tpu_custom_call.1
= control target key start
LH: loop header
LB: loop body
LE: loop exit
PB: predicated region body
PF: predicated region fallthrough
CT: control target
= control target key end

     0   :  { %s3047_s0 = inlined_call_operand.hbm [shape: f32[16,128], index: 0, kind: input, shape index: {}]   ;;  %s3048_s1 = inlined_call_operand.vmem [shape: f32[1,128], index: 1, kind: input, shape index: {}]   ;;  %s3049_s2 = inlined_call_operand.vmem [shape: f32[1,128], index: 2, kind: input, shape index: {}]   ;;  %s3050_s3 = inlined_call_operand.vmem [shape: f32[1,128], index: 3, kind: input, shape index: {}]   ;;  %s3051_s4 = inlined_call_operand.hbm [shape: bf16[128,128], index: 4, kind: input, shape index: {}]   ;;  %s3052_s5 = inlined_call_operand.vmem [shape: f32[1,128], index: 5, kind: input, shape index: {}]   ;;  %s3053_s6 = inlined_call_operand.hbm [shape: bf16[128,128], index: 6, kind: input, shape index: {}]   ;;  %s3054_s7 = inlined_call_operand.vmem [shape: f32[1,128], index: 7, kind: input, shape index: {}]   ;;  %s3055_s8 = inlined_call_operand.hbm [shape: bf16[128,128], index: 8, kind: input, shape index: {}]   ;;  %s3056_s9 = inlined_call_operand.vmem [shape: f32[1,128], index: 9, kind: input, shape index: {}]   ;;  %s3057_s10 = inlined_call_operand.hbm [shape: bf16[128,128], index: 10, kind: input, shape index: {}]   ;;  %s3058_s11 = inlined_call_operand.vmem [shape: f32[1,128], index: 11, kind: input, shape index: {}]   ;;  %s3059_s12 = inlined_call_operand.hbm [shape: bf16[128,128], index: 12, kind: input, shape index: {}]   ;;  %s3060_s13 = inlined_call_operand.vmem [shape: f32[1,128], index: 13, kind: input, shape index: {}]   ;;  %s3061_s14 = inlined_call_operand.hbm [shape: bf16[128,128], index: 14, kind: input, shape index: {}]   ;;  %s3062_s15 = inlined_call_operand.vmem [shape: f32[1,128], index: 15, kind: input, shape index: {}]   ;;  %s3063_s16 = inlined_call_operand.hbm [shape: bf16[128,128], index: 16, kind: input, shape index: {}]   ;;  %s3064_s17 = inlined_call_operand.vmem [shape: f32[1,128], index: 17, kind: input, shape index: {}]   ;;  %s3065_s18 = inlined_call_operand.hbm [shape: bf16[16,128], index: 18, kind: output, shape index: {}]  }
   0x1   :  { %3071 = sst [smem:[#allocation23_spill]] %s3047_s0 }
   0x2   :  { %3072 = sst [smem:[#allocation24_spill]] %s3048_s1 }
   0x3   :  { %3073 = sst [smem:[#allocation25_spill]] %s3049_s2 }
   0x4   :  { %3074 = sst [smem:[#allocation26_spill]] %s3051_s4 }
   0x5   :  { %3075 = sst [smem:[#allocation27_spill]] %s3054_s7 }
   0x6   :  { %3076 = sst [smem:[#allocation28_spill]] %s3056_s9 }
   0x7   :  { %3077 = sst [smem:[#allocation29_spill]] %s3058_s11 }
   0x8   :  { %3078 = sst [smem:[#allocation30_spill]] %s3060_s13 }
   0x9   :  { %3079 = sst [smem:[#allocation31_spill]] %s3062_s15 }
   0xa   :  { %3080 = sst [smem:[#allocation32_spill]] %s3064_s17 }
   0xb   :  { %3081 = sst [smem:[#allocation33_spill]] %s3065_s18 }
   0xc   :  { %23 = vsyncpa [#allocation3], 0 }
   0xd   :  { %25 = vsyncpa [#allocation3 + $0x1], 0 }
   0xe   :  { %26 = vsyncpa [#allocation6], 0 }
   0xf   :  { %27 = vsyncpa [#allocation9], 0 }
  0x10   :  { %28 = vsyncpa [#allocation12], 0 }
  0x11   :  { %29 = vsyncpa [#allocation15], 0 }
  0x12   :  { %30 = vsyncpa [#allocation4], 0 }
  0x13   :  { %32 = vsyncpa [#allocation4 + $0x1], 0  ;;  %s2579_s27 = smov 0   ;;  %s2581_s28 = smov 0  }
  0x14   :  { %s2583_s29 = smov 0   ;;  %s2585_s30 = smov 0  }
  0x15 LB: > { %s2471_s0 = smov [#allocation5]   ;;  %s2600_s1 = sadd.s32 4294967295, %s2469_s30   ;;  %s2469_s30 = sphi %s2585_s30, %s3116_s30   ;;  %s2465_s29 = sphi %s2583_s29, %s3115_s29   ;;  %s2461_s28 = sphi %s2581_s28, %s3114_s28   ;;  %s2457_s27 = sphi %s2579_s27, %s3113_s27  }
  0x16   : > { %s473_s19 = sshll.u32 %s2471_s0, 4  ;;  %p1683_p0 = scmp.ge.s32.totalorder %s2469_s30, 1  ;;  %s2605_s19 = int_to_ptr.vmem [resolvable:$true] %s473_s19 }
  0x17   : > { %p3068_p1 = scmp.eq.s32.totalorder %s2600_s1, 0  ;;  %p452_p2 = scmp.lt.s32.totalorder %s2469_s30, 3 }
  0x18   : > { %s2472_s21 = smov [#allocation8]   ;;  %s2473_s23 = smov [#allocation11]  }
  0x19   : > { %p2607_p3 = pnand %p1683_p0, %p452_p2  ;;  %s505_s22 = sshll.u32 %s2472_s21, 4  ;;  %s2620_s22 = int_to_ptr.vmem [resolvable:$true] %s505_s22 }
  0x1a   : > { %s537_s24 = sshll.u32 %s2473_s23, 4  ;;  %s3084_s4 = sld [smem:[#allocation26_spill]]  ;;  %s2622_s24 = int_to_ptr.vmem [resolvable:$true] %s537_s24 }
  0x1b   : > { %s3082_s20 = scalar_select %p2607_p3, 1, 0 }
  0x1c   : > { %p2010_p5 = pneg %p2607_p3 }
  0x1e   : > { %p2616_p6 = pnand %p2010_p5, %p3068_p1 }
  0x20   : > { %s2161_s0 = scalar_lea.hbm %s3084_s4, 1024  ;;  %p2632_p8 = pneg %p2616_p6 }
  0x21   : > { %p2162_p7 = scmp.ne.s32.totalorder %s3084_s4, %s2161_s0  ;;  %p2168_p11 = scmp.lt.u32.totalorder %s2161_s0, %s3084_s4 }
  0x23   : > { %p2164_p9 = pnand %p2632_p8, %p2162_p7 }
  0x25   : > { %p2165_p10 = pneg %p2164_p9 }
  0x27   : > { %p2170_p12 = pnand %p2168_p11, %p2165_p10 }
  0x29   : > { %2173 = shalt.err (!%p2170_p12)
}
  0x2a   : > { %s2174_s17 = scalar_lea.vmem %s2605_s19, 1024  ;;  %p2182_p5 = scmp.lt.s32.totalorder %s2605_s19, %s2605_s19 }
  0x2b   : > { %p2175_p13 = scmp.ne.s32.totalorder %s2605_s19, %s2174_s17  ;;  %p2183_p4 = scmp.lt.s32.totalorder %s2174_s17, %s2174_s17 }
  0x2d   : > { %p2177_p0 = pnand %p2175_p13, %p2632_p8  ;;  %p2184_p7 = por %p2183_p4, %p2182_p5 }
  0x2f   : > { %p2178_p2 = pneg %p2177_p0 }
  0x31   : > { %p2185_p9 = pnand %p2184_p7, %p2178_p2 }
  0x33   : > { %2188 = shalt.err (!%p2185_p9)
}
  0x34   : > { %s2474_s18 = smov 64   ;;  %s2475_s15 = smov 4  }
  0x35   : > { %2013 = dma.hbm_to_vmem [thread:$0]  (!%p2616_p6), %s3084_s4, 1024, %s2605_s19, [#allocation6], %s2474_s18, %s2474_s18, %s2475_s15  }
  0x36   : > { %s2189_s17 = scalar_lea.hbm %s3055_s8, 1024 }
  0x37   : > { %p2190_p4 = scmp.ne.s32.totalorder %s3055_s8, %s2189_s17  ;;  %p2196_p12 = scmp.lt.u32.totalorder %s2189_s17, %s3055_s8 }
  0x39   : > { %p2192_p10 = pnand %p2190_p4, %p2632_p8 }
  0x3b   : > { %p2193_p11 = pneg %p2192_p10 }
  0x3d   : > { %p2198_p13 = pnand %p2196_p12, %p2193_p11 }
  0x3f   : > { %2201 = shalt.err (!%p2198_p13)
}
  0x40   : > { %s2202_s19 = scalar_lea.vmem %s2620_s22, 1024  ;;  %p2210_p7 = scmp.lt.s32.totalorder %s2620_s22, %s2620_s22 }
  0x41   : > { %p2203_p0 = scmp.ne.s32.totalorder %s2620_s22, %s2202_s19  ;;  %p2211_p9 = scmp.lt.s32.totalorder %s2202_s19, %s2202_s19 }
  0x43   : > { %p2205_p2 = pnand %p2203_p0, %p2632_p8  ;;  %p2212_p4 = por %p2211_p9, %p2210_p7 }
  0x45   : > { %p2206_p5 = pneg %p2205_p2 }
  0x47   : > { %p2213_p10 = pnand %p2212_p4, %p2206_p5 }
  0x49   : > { %2216 = shalt.err (!%p2213_p10)
}
  0x4a   : > { %2019 = dma.hbm_to_vmem [thread:$0]  (!%p2616_p6), %s3055_s8, 1024, %s2620_s22, [#allocation9], %s2474_s18, %s2474_s18, %s2475_s15  }
  0x4b   : > { %s2217_s25 = scalar_lea.hbm %s3059_s12, 1024 }
  0x4c   : > { %p2218_p11 = scmp.ne.s32.totalorder %s3059_s12, %s2217_s25  ;;  %p2224_p0 = scmp.lt.u32.totalorder %s2217_s25, %s3059_s12 }
  0x4e   : > { %p2220_p12 = pnand %p2218_p11, %p2632_p8 }
  0x50   : > { %p2221_p13 = pneg %p2220_p12 }
  0x52   : > { %p2226_p2 = pnand %p2224_p0, %p2221_p13 }
  0x54   : > { %2229 = shalt.err (!%p2226_p2)
}
  0x55   : > { %s2230_s22 = scalar_lea.vmem %s2622_s24, 1024  ;;  %p2238_p4 = scmp.lt.s32.totalorder %s2622_s24, %s2622_s24 }
  0x56   : > { %p2231_p5 = scmp.ne.s32.totalorder %s2622_s24, %s2230_s22  ;;  %p2239_p10 = scmp.lt.s32.totalorder %s2230_s22, %s2230_s22 }
  0x58   : > { %p2233_p7 = pnand %p2231_p5, %p2632_p8  ;;  %p2240_p11 = por %p2239_p10, %p2238_p4 }
  0x5a   : > { %p2234_p9 = pneg %p2233_p7 }
  0x5c   : > { %p2241_p12 = pnand %p2240_p11, %p2234_p9 }
  0x5e   : > { %2244 = shalt.err (!%p2241_p12)
}
  0x5f   : > { %2025 = dma.hbm_to_vmem [thread:$0]  (!%p2616_p6), %s3059_s12, 1024, %s2622_s24, [#allocation12], %s2474_s18, %s2474_s18, %s2475_s15  }
  0x60   : > { %s2476_s9 = smov [#allocation7]   ;;  %s2477_s13 = smov [#allocation10]  }
  0x61   : > { %s489_s11 = sshll.u32 %s2476_s9, 4  ;;  %s521_s25 = sshll.u32 %s2477_s13, 4  ;;  %s490_s11 = int_to_ptr.vmem [resolvable:$true] %s489_s11  ;;  %s522_s25 = int_to_ptr.vmem [resolvable:$true] %s521_s25 }
  0x62   : > { %s2245_s23 = scalar_lea.hbm %s3053_s6, 1024 }
  0x63   : > { %p2246_p13 = scmp.ne.s32.totalorder %s3053_s6, %s2245_s23  ;;  %p2252_p5 = scmp.lt.u32.totalorder %s2245_s23, %s3053_s6 }
  0x65   : > { %p2248_p0 = pnand %p2246_p13, %p2632_p8 }
  0x67   : > { %p2249_p2 = pneg %p2248_p0 }
  0x69   : > { %p2254_p7 = pnand %p2252_p5, %p2249_p2 }
  0x6b   : > { %2257 = shalt.err (!%p2254_p7)
}
  0x6c   : > { %s2258_s24 = scalar_lea.vmem %s490_s11, 1024  ;;  %p2266_p11 = scmp.lt.s32.totalorder %s490_s11, %s490_s11 }
  0x6d   : > { %p2259_p9 = scmp.ne.s32.totalorder %s490_s11, %s2258_s24  ;;  %p2267_p12 = scmp.lt.s32.totalorder %s2258_s24, %s2258_s24 }
  0x6f   : > { %p2261_p4 = pnand %p2259_p9, %p2632_p8  ;;  %p2268_p1 = por %p2267_p12, %p2266_p11 }
  0x71   : > { %p2262_p10 = pneg %p2261_p4 }
  0x73   : > { %p2269_p3 = pnand %p2268_p1, %p2262_p10 }
  0x75   : > { %2272 = shalt.err (!%p2269_p3)
}
  0x76   : > { %2016 = dma.hbm_to_vmem [thread:$0]  (!%p2616_p6), %s3053_s6, 1024, %s490_s11, [#allocation6], %s2474_s18, %s2474_s18, %s2475_s15  }
  0x77   : > { %s2273_s26 = scalar_lea.hbm %s3057_s10, 1024 }
  0x78   : > { %p2274_p1 = scmp.ne.s32.totalorder %s3057_s10, %s2273_s26  ;;  %p2280_p0 = scmp.lt.u32.totalorder %s2273_s26, %s3057_s10 }
  0x7a   : > { %p2276_p3 = pnand %p2274_p1, %p2632_p8 }
  0x7c   : > { %p2277_p13 = pneg %p2276_p3 }
  0x7e   : > { %p2282_p2 = pnand %p2280_p0, %p2277_p13 }
  0x80   : > { %2285 = shalt.err (!%p2282_p2)
}
  0x81   : > { %s2286_s19 = scalar_lea.vmem %s522_s25, 1024  ;;  %p2294_p4 = scmp.lt.s32.totalorder %s522_s25, %s522_s25 }
  0x82   : > { %p2287_p5 = scmp.ne.s32.totalorder %s522_s25, %s2286_s19  ;;  %p2295_p10 = scmp.lt.s32.totalorder %s2286_s19, %s2286_s19 }
  0x84   : > { %p2289_p7 = pnand %p2287_p5, %p2632_p8  ;;  %p2296_p11 = por %p2295_p10, %p2294_p4 }
  0x86   : > { %p2290_p9 = pneg %p2289_p7 }
  0x88   : > { %p2297_p12 = pnand %p2296_p11, %p2290_p9 }
  0x8a   : > { %2300 = shalt.err (!%p2297_p12)
}
  0x8b   : > { %2022 = dma.hbm_to_vmem [thread:$0]  (!%p2616_p6), %s3057_s10, 1024, %s522_s25, [#allocation9], %s2474_s18, %s2474_s18, %s2475_s15  }
  0x8c   : > { %s2478_s4 = smov [#allocation13]   ;;  %s2479_s9 = smov [#allocation14]  }
  0x8d   : > { %s553_s7 = sshll.u32 %s2478_s4, 4  ;;  %s569_s13 = sshll.u32 %s2479_s9, 4  ;;  %s554_s7 = int_to_ptr.vmem [resolvable:$true] %s553_s7  ;;  %s570_s13 = int_to_ptr.vmem [resolvable:$true] %s569_s13 }
  0x8e   : > { %s2301_s23 = scalar_lea.hbm %s3061_s14, 1024 }
  0x8f   : > { %p2302_p1 = scmp.ne.s32.totalorder %s3061_s14, %s2301_s23  ;;  %p2308_p0 = scmp.lt.u32.totalorder %s2301_s23, %s3061_s14 }
  0x91   : > { %p2304_p3 = pnand %p2302_p1, %p2632_p8 }
  0x93   : > { %p2305_p13 = pneg %p2304_p3 }
  0x95   : > { %p2310_p2 = pnand %p2308_p0, %p2305_p13 }
  0x97   : > { %2313 = shalt.err (!%p2310_p2)
}
  0x98   : > { %s2314_s25 = scalar_lea.vmem %s554_s7, 1024  ;;  %p2322_p4 = scmp.lt.s32.totalorder %s554_s7, %s554_s7 }
  0x99   : > { %p2315_p5 = scmp.ne.s32.totalorder %s554_s7, %s2314_s25  ;;  %p2323_p10 = scmp.lt.s32.totalorder %s2314_s25, %s2314_s25 }
  0x9b   : > { %p2317_p7 = pnand %p2315_p5, %p2632_p8  ;;  %p2324_p11 = por %p2323_p10, %p2322_p4 }
  0x9d   : > { %p2318_p9 = pneg %p2317_p7 }
  0x9f   : > { %p2325_p12 = pnand %p2324_p11, %p2318_p9 }
  0xa1   : > { %2328 = shalt.err (!%p2325_p12)
}
  0xa2   : > { %2028 = dma.hbm_to_vmem [thread:$0]  (!%p2616_p6), %s3061_s14, 1024, %s554_s7, [#allocation12], %s2474_s18, %s2474_s18, %s2475_s15  }
  0xa3   : > { %s2329_s0 = scalar_lea.hbm %s3063_s16, 1024 }
  0xa4   : > { %p2330_p1 = scmp.ne.s32.totalorder %s3063_s16, %s2329_s0  ;;  %p2336_p0 = scmp.lt.u32.totalorder %s2329_s0, %s3063_s16 }
  0xa6   : > { %p2332_p3 = pnand %p2330_p1, %p2632_p8 }
  0xa8   : > { %p2333_p13 = pneg %p2332_p3 }
  0xaa   : > { %p2338_p2 = pnand %p2336_p0, %p2333_p13 }
  0xac   : > { %2341 = shalt.err (!%p2338_p2)
}
  0xad   : > { %s2342_s11 = scalar_lea.vmem %s570_s13, 1024  ;;  %p2350_p4 = scmp.lt.s32.totalorder %s570_s13, %s570_s13 }
  0xae   : > { %p2343_p5 = scmp.ne.s32.totalorder %s570_s13, %s2342_s11  ;;  %p2351_p10 = scmp.lt.s32.totalorder %s2342_s11, %s2342_s11 }
  0xb0   : > { %p2345_p7 = pnand %p2343_p5, %p2632_p8  ;;  %p2352_p11 = por %p2351_p10, %p2350_p4 }
  0xb2   : > { %p2346_p9 = pneg %p2345_p7 }
  0xb4   : > { %p2353_p12 = pnand %p2352_p11, %p2346_p9 }
  0xb6   : > { %2356 = shalt.err (!%p2353_p12)
}
  0xb7   : > { %2031 = dma.hbm_to_vmem [thread:$0]  (!%p2616_p6), %s3063_s16, 1024, %s570_s13, [#allocation15], %s2474_s18, %s2474_s18, %s2475_s15  }
  0xb8   : > { %s1682_s2 = sadd.s32 4294967294, %s2469_s30   ;;  %s2794_s21 = sadd.s32 1, %s2469_s30  }
  0xb9   : > { %s45_s24 = sadd.s32 1, %s2465_s29  ;;  %s42_s4 = ssub.s32 %s2469_s30, %s2794_s21 }
  0xba   : > { %p52_p8 = scmp.ne.s32.totalorder %s2465_s29, %s2461_s28  ;;  %p43_p1 = scmp.eq.s32.totalorder %s42_s4, 0 }
  0xbb   : > { %p53_p3 = scmp.eq.s32.totalorder %s2469_s30, 0  ;;  %p58_p13 = scmp.ne.s32.totalorder %s2461_s28, %s2457_s27 }
  0xbc   : > { %p439_p0 = scmp.eq.s32.totalorder %s2600_s1, 1  ;;  %p3086_p5 = scmp.eq.s32.totalorder %s2600_s1, 0 }
  0xbd   : > { %s2806_s9 = scalar_select %p43_p1, %s2465_s29, %s45_s24  }
  0xbe   : > { %p54_p2 = por %p53_p3, %p52_p8  ;;  %p2810_p7 = por %p3086_p5, %p58_p13 }
  0xbf   : > { %p2814_p6 = por %p439_p0, %p52_p8  ;;  %p445_p9 = scmp.eq.s32.totalorder %s1682_s2, 1 }
  0xc0   : > { %p2047_p4 = scmp.lt.s32.totalorder %s2469_s30, 2  ;;  %s586_s15 = sand.u32 1, %s2465_s29  }
  0xc1   : > { %s3088_s18 = scalar_select %p2814_p6, 1, 0 }
  0xc2   : > { %p2820_p10 = por %p445_p9, %p58_p13  ;;  %s1692_s0 = sshll.u32 %s586_s15, 3 }
  0xc3   : > { %s1693_s23 = sshll.u32 %s2469_s30, 7  ;;  %s3090_s19 = sld [smem:[#allocation23_spill]] }
  0xc4   : > { %s3089_s13 = scalar_select %p2820_p10, 1, 0 }
  0xc5   : > { %s590_s7 = scalar_lea.vmem [#allocation2], %s1692_s0  ;;  %p2830_p11 = pnand %p2047_p4, %p54_p2 }
  0xc6   : > { %s597_s25 = sshll.u32 %s590_s7, 4  ;;  %s587_s24 = scalar_lea.sflag [#allocation3], %s586_s15  ;;  %s2834_s25 = int_to_ptr.vmem [resolvable:$true] %s597_s25 }
  0xc7   : > { %p2359_p8 = pneg %p2830_p11 }
  0xc9   : > { %s2828_s11 = scalar_lea.hbm %s3090_s19, %s1693_s23  ;;  %s2362_s17 = scalar_lea.hbm %s3090_s19, 256 }
  0xca   : > { %s2357_s4 = scalar_lea.hbm %s2828_s11, 128  ;;  %p2363_p13 = scmp.lt.u32.totalorder %s2828_s11, %s3090_s19 }
  0xcb   : > { %p2358_p12 = scmp.ne.s32.totalorder %s2828_s11, %s2357_s4  ;;  %p2364_p0 = scmp.lt.u32.totalorder %s2362_s17, %s2357_s4 }
  0xcc   : > { %p2366_p5 = scmp.lt.u32.totalorder %s2357_s4, %s2828_s11 }
  0xcd   : > { %p2360_p1 = pnand %p2359_p8, %p2358_p12  ;;  %p2365_p2 = por %p2364_p0, %p2363_p13 }
  0xcf   : > { %p2361_p3 = pneg %p2360_p1  ;;  %p2367_p9 = por %p2366_p5, %p2365_p2 }
  0xd1   : > { %p2368_p4 = pnand %p2367_p9, %p2361_p3 }
  0xd3   : > { %2371 = shalt.err (!%p2368_p4)
}
  0xd4   : > { %s2372_s15 = scalar_lea.vmem %s2834_s25, 128  ;;  %s2480_s23 = smov [#allocation2]  }
  0xd5   : > { %p2373_p12 = scmp.ne.s32.totalorder %s2834_s25, %s2372_s15  ;;  %s2377_s0 = sshll.u32 %s2480_s23, 4  ;;  %s2378_s0 = int_to_ptr.vmem [resolvable:$false] %s2377_s0 }
  0xd6   : > { %s2379_s22 = scalar_lea.vmem %s2378_s0, 256  ;;  %p2380_p6 = scmp.lt.s32.totalorder %s2834_s25, %s2378_s0 }
  0xd7   : > { %p2375_p1 = pnand %p2373_p12, %p2359_p8  ;;  %p2381_p13 = scmp.lt.s32.totalorder %s2379_s22, %s2372_s15 }
  0xd9   : > { %p2376_p10 = pneg %p2375_p1  ;;  %p2382_p0 = por %p2381_p13, %p2380_p6 }
  0xdb   : > { %p2383_p2 = pnand %p2382_p0, %p2376_p10 }
  0xdd   : > { %2386 = shalt.err (!%p2383_p2)
}
  0xde   : > { %2035 = dma.hbm_to_vmem [thread:$0]  (!%p2830_p11), %s2828_s11, 128, %s2834_s25, %s587_s24  }
  0xdf   : > { %p3092_p3 = scmp.ne.s32.totalorder %s3082_s20, 0 }
  0xe0   : > { %s2864_s4 = sand.u32 (!%p3092_p3), 1, %s2461_s28  }
  0xe1   : > { %606 = sbr.rel (%p3092_p3) target bundleno = 2131 (0x853), region = 92  ;;  %s1695_s17 = sshll.u32 (!%p3092_p3), %s2864_s4, 3 }
  0xe2   : > { %s609_s7 = scalar_lea.sflag (!%p3092_p3), [#allocation3], %s2864_s4  ;;  %s612_s15 = scalar_lea.vmem (!%p3092_p3), [#allocation2], %s1695_s17 }
  0xe8   : > { %2432 = dma.done.wait (%p2810_p7), %s609_s7, 128  }
  0xe9   : > { %2434 = vsyncadd (%p2810_p7), %s609_s7, 4294967168  ;;  %p3093_p6 = scmp.eq.s32.totalorder %s2600_s1, 0 }
  0xeb   : > { %2436 = dma.done.wait (%p3093_p6), [#allocation6], 2048   ;;  %p3094_p10 = pmov %p3093_p6 }
  0xec   : > { %p3095_p11 = pmov %p3093_p6 }
  0xed   : > { %2438 = vsyncadd (%p3094_p10), [#allocation6], 4294965248 }
  0xee   : > { %2440 = dma.done.wait (%p3095_p11), [#allocation9], 2048   ;;  %p3096_p8 = pmov %p3093_p6 }
  0xef   : > { %p3097_p5 = pmov %p3093_p6 }
  0xf0   : > { %2442 = vsyncadd (%p3096_p8), [#allocation9], 4294965248 }
  0xf1   : > { %2444 = dma.done.wait (%p3097_p5), [#allocation12], 2048   ;;  %p3098_p9 = pmov %p3097_p5 }
  0xf2   : > { %p3099_p7 = pmov %p3097_p5 }
  0xf3   : > { %2446 = vsyncadd (%p3098_p9), [#allocation12], 4294965248 }
  0xf4   : > { %2448 = dma.done.wait (%p3099_p7), [#allocation15], 1024   ;;  %p3100_p4 = pmov %p3097_p5 }
  0xf5   : > { %v694_v0 = vld [vmem:[%s612_s15] sm:$0xff]  ;;  %v2099_v1 = vld [vmem:[#allocation5] sm:$0xff]   ;;  %v2100_v2 = vld [vmem:[#allocation5 + $0x8] sm:$0xff]   ;;  %v2481_v3 = vmov 0.0   ;;  %vm2482_vm0 = vmmov 0   ;;  %s3101_s2 = sld [smem:[#allocation24_spill]] }
  0xf6   : > { %2450 = vsyncadd (%p3100_p4), [#allocation15], 4294966272  ;;  %695 = vadd.xlane.f32.xlu0 %v694_v0  ;;  %1838 = vmatprep.subr.bf16.mxu0 %v2481_v3  ;;  %v1704_v6 = vld [vmem:[%s3050_s3] ss:$0 sm:$0xff]  ;;  %v2102_v11 = vld [vmem:[#allocation5 + $0x18] sm:$0xff]   ;;  %s3102_s0 = sld [smem:[#allocation25_spill]] }
  0xf7   : > { %1858 = vmatprep.subr.bf16.mxu1 %v2481_v3  ;;  %1839 = vmatpush3.bf16.msra.mxu0 %v2099_v1  ;;  %v2101_v10 = vld [vmem:[#allocation5 + $0x10] sm:$0xff]   ;;  %v2103_v12 = vld [vmem:[#allocation5 + $0x20] sm:$0xff]   ;;  %v2104_v13 = vld [vmem:[#allocation5 + $0x28] sm:$0xff]   ;;  %s3103_s20 = sld [smem:[#allocation27_spill]]  ;;  %s3104_s25 = sld [smem:[#allocation28_spill]] }
  0xf8   : > { %1840 = vmatprep.subr.bf16.mxu0 %v2481_v3  ;;  %1854 = vmatprep.mubr.msk.bf16.mxu0 %vm2482_vm0, %v2481_v3  ;;  %v2105_v14 = vld [vmem:[#allocation5 + $0x30] sm:$0xff]   ;;  %v2106_v15 = vld [vmem:[#allocation5 + $0x38] sm:$0xff]   ;;  %v2107_v16 = vld [vmem:[#allocation7] sm:$0xff]   ;;  %s3105_s23 = sld [smem:[#allocation29_spill]]  ;;  %s3106_s17 = sld [smem:[#allocation30_spill]] }
  0xf9   : > { %1874 = vmatprep.mubr.msk.bf16.mxu1 %vm2482_vm0, %v2481_v3  ;;  %1859 = vmatpush3.bf16.msra.mxu1 %v2107_v16  ;;  %v2108_v17 = vld [vmem:[#allocation7 + $0x8] sm:$0xff]   ;;  %v2109_v18 = vld [vmem:[#allocation7 + $0x10] sm:$0xff]   ;;  %v2110_v19 = vld [vmem:[#allocation7 + $0x18] sm:$0xff]   ;;  %s1772_s24 = sshll.u32 %s2600_s1, 6  ;;  %s3109_s7 = sld [smem:[#allocation33_spill]] }
  0xfa   : > { %1860 = vmatprep.subr.bf16.mxu1 %v2481_v3  ;;  %v2111_v20 = vld [vmem:[#allocation7 + $0x20] sm:$0xff]   ;;  %v2112_v21 = vld [vmem:[#allocation7 + $0x28] sm:$0xff]   ;;  %v2113_v32 = vld [vmem:[#allocation7 + $0x30] sm:$0xff]   ;;  %p3110_p1 = scmp.ne.s32.totalorder %s3088_s18, 0  ;;  %s2483_s1 = smov [#allocation16]  }
  0xfb   : > { %1841 = vmatpush3.bf16.msra.mxu0 %v2100_v2  ;;  %v1705_v26 = vld [vmem:[%s3101_s2] ss:$0 sm:$0xff]  ;;  %v2114_v33 = vld [vmem:[#allocation7 + $0x38] sm:$0xff]   ;;  %v2115_v34 = vld [vmem:[#allocation8] sm:$0xff]   ;;  %s1703_s2 = sshll.u32 %s2864_s4, 2  ;;  %s2391_s11 = sshll.u32 %s2483_s1, 4  ;;  %s2392_s11 = int_to_ptr.vmem [resolvable:$false] %s2391_s11 }
  0xfc   : > { %1842 = vmatprep.subr.bf16.mxu0 %v2481_v3  ;;  %v1706_v28 = vld [vmem:[%s3102_s0] ss:$0 sm:$0xff]  ;;  %v2116_v35 = vld [vmem:[#allocation8 + $0x8] sm:$0xff]   ;;  %v2118_v37 = vld [vmem:[#allocation8 + $0x18] sm:$0xff]  }
  0xfd   : > { %1861 = vmatpush3.bf16.msra.mxu1 %v2108_v17  ;;  %v2117_v36 = vld [vmem:[#allocation8 + $0x10] sm:$0xff]   ;;  %v2119_v38 = vld [vmem:[#allocation8 + $0x20] sm:$0xff]   ;;  %v2120_v39 = vld [vmem:[#allocation8 + $0x28] sm:$0xff]  }
  0xfe   : > { %1862 = vmatprep.subr.bf16.mxu1 %v2481_v3  ;;  %v1707_v40 = vld [vmem:[%s3052_s5] ss:$0 sm:$0xff]  ;;  %v2122_v49 = vld [vmem:[#allocation8 + $0x38] sm:$0xff]   ;;  %v2123_v50 = vld [vmem:[#allocation10] sm:$0xff]  }
  0xff   : > { %1843 = vmatpush3.bf16.msra.mxu0 %v2101_v10  ;;  %v2121_v48 = vld [vmem:[#allocation8 + $0x30] sm:$0xff]   ;;  %v2124_v51 = vld [vmem:[#allocation10 + $0x8] sm:$0xff]   ;;  %v2126_v53 = vld [vmem:[#allocation10 + $0x18] sm:$0xff]   ;;  %s3003_s15 = scalar_lea.hbm %s3109_s7, %s1772_s24 }
 0x100   : > { %1844 = vmatprep.subr.bf16.mxu0 %v2481_v3  ;;  %v2125_v52 = vld [vmem:[#allocation10 + $0x10] sm:$0xff]   ;;  %v2127_v54 = vld [vmem:[#allocation10 + $0x20] sm:$0xff]   ;;  %v2128_v55 = vld [vmem:[#allocation10 + $0x28] sm:$0xff]  }
 0x101   : > { %1863 = vmatpush3.bf16.msra.mxu1 %v2109_v18  ;;  %v1716_v56 = vld [vmem:[%s3103_s20] ss:$0 sm:$0xff]  ;;  %v2130_v2 = vld [vmem:[#allocation10 + $0x38] sm:$0xff]   ;;  %s3107_s20 = sld [smem:[#allocation31_spill]] }
 0x102   : > { %1864 = vmatprep.subr.bf16.mxu1 %v2481_v3  ;;  %v2129_v1 = vld [vmem:[#allocation10 + $0x30] sm:$0xff]  }
 0x103   : > { %1845 = vmatpush3.bf16.msra.mxu0 %v2102_v11  ;;  %v1725_v10 = vld [vmem:[%s3104_s25] ss:$0 sm:$0xff]  ;;  %s3108_s25 = sld [smem:[#allocation32_spill]] }
 0x104   : > { %1846 = vmatprep.subr.bf16.mxu0 %v2481_v3  ;;  %v2137_v18 = vld [vmem:[#allocation11 + $0x30] sm:$0xff]  }
 0x105   : > { %1865 = vmatpush3.bf16.msra.mxu1 %v2110_v19  ;;  %v2138_v19 = vld [vmem:[#allocation11 + $0x38] sm:$0xff]  }
 0x106   : > { %1866 = vmatprep.subr.bf16.mxu1 %v2481_v3 }
 0x107   : > { %1847 = vmatpush3.bf16.msra.mxu0 %v2103_v12 }
 0x108   : > { %1848 = vmatprep.subr.bf16.mxu0 %v2481_v3 }
 0x109   : > { %1867 = vmatpush3.bf16.msra.mxu1 %v2111_v20  ;;  %v2139_v20 = vld [vmem:[#allocation13] sm:$0xff]  }
 0x10a   : > { %1868 = vmatprep.subr.bf16.mxu1 %v2481_v3 }
 0x10b   : > { %1849 = vmatpush3.bf16.msra.mxu0 %v2104_v13 }
 0x10c   : > { %1850 = vmatprep.subr.bf16.mxu0 %v2481_v3 }
 0x10d   : > { %1869 = vmatpush3.bf16.msra.mxu1 %v2112_v21  ;;  %v2140_v21 = vld [vmem:[#allocation13 + $0x8] sm:$0xff]  }
 0x10e   : > { %1870 = vmatprep.subr.bf16.mxu1 %v2481_v3 }
 0x10f   : > { %1851 = vmatpush3.bf16.msra.mxu0 %v2105_v14 }
 0x110   : > { %1852 = vmatprep.subr.bf16.mxu0 %v2481_v3 }
 0x111   : > { %1871 = vmatpush3.bf16.msra.mxu1 %v2113_v32 }
 0x112   : > { %1872 = vmatprep.subr.bf16.mxu1 %v2481_v3 }
 0x113   : > { %1853 = vmatpush3.bf16.msra.mxu0 %v2106_v15 }
 0x114   : > { %1878 = vmatprep.subr.bf16.mxu0 %v2481_v3 }
 0x115   : > { %1873 = vmatpush3.bf16.msra.mxu1 %v2114_v33 }
 0x116   : > { %1898 = vmatprep.subr.bf16.mxu1 %v2481_v3 }
 0x183   : > { %v696_v4 = vpop.xlane.xlu0 %695 }
 0x184   : > { %v697_v5 = vmul.f32 0.03125, %v696_v4  ;;  %v2131_v4 = vld [vmem:[#allocation11] sm:$0xff]  }
 0x186   : > { %v698_v7 = vsub.f32 %v694_v0, %v697_v5  ;;  %v2132_v5 = vld [vmem:[#allocation11 + $0x8] sm:$0xff]  }
 0x188   : > { %v706_v8 = vmul.f32 %v1704_v6, %v698_v7  ;;  %v2133_v6 = vld [vmem:[#allocation11 + $0x10] sm:$0xff]  }
 0x18a   : > { %v707_v9 = vmul.f32 %v706_v8, %v706_v8  ;;  %v2135_v8 = vld [vmem:[#allocation11 + $0x20] sm:$0xff]  }
 0x18c   : > { %708 = vadd.xlane.f32.xlu0 %v707_v9  ;;  %v2136_v9 = vld [vmem:[#allocation11 + $0x28] sm:$0xff]  }
 0x219   : > { %v709_v22 = vpop.xlane.xlu0 %708 }
 0x21a   : > { %v710_v23 = vmul.f32 0.03125, %v709_v22  ;;  %v2141_v22 = vld [vmem:[#allocation13 + $0x10] sm:$0xff]  }
 0x21c   : > { %v711_v24 = vadd.f32 1e-05, %v710_v23  ;;  %v2142_v23 = vld [vmem:[#allocation13 + $0x18] sm:$0xff]  }
 0x21e   : > { %2155 = vrsqrt.f32 %v711_v24  ;;  %v2143_v24 = vld [vmem:[#allocation13 + $0x20] sm:$0xff]  }
 0x228   : > { %v2156_v25 = vpop.eup %2155 }
 0x229   : > { %v713_v27 = vmul.f32 %v2156_v25, %v698_v7  ;;  %v2134_v7 = vld [vmem:[#allocation11 + $0x18] sm:$0xff]   ;;  %v2144_v25 = vld [vmem:[#allocation13 + $0x28] sm:$0xff]  }
 0x22b   : > { %v721_v29 = vmul.f32 %v1705_v26, %v713_v27  ;;  %v1734_v26 = vld [vmem:[%s3105_s23] ss:$0 sm:$0xff]  ;;  %s692_s23 = scalar_lea.vmem [#allocation16], %s1703_s2 }
 0x22c   : > { %s1545_s0 = sshll.u32 %s692_s23, 4  ;;  %s3005_s0 = int_to_ptr.vmem [resolvable:$true] %s1545_s0 }
 0x22d   : > { %v2917_v30 = vadd.f32 %v1706_v28, %v721_v29  ;;  %s2387_s26 = scalar_lea.vmem %s3005_s0, 64  ;;  %p2394_p2 = scmp.lt.s32.totalorder %s3005_s0, %s2392_s11 }
 0x22e   : > { %p2388_p12 = scmp.ne.s32.totalorder %s3005_s0, %s2387_s26 }
 0x22f   : > { %v730_v31 = vpack.c.bf16 %v2917_v30, %v2917_v30 }
 0x230   : > { %p2389_p13 = pnand %p2388_p12, %p3110_p1 }
 0x231   : > { %1855 = vmatmul.mubr.bf16.vlgmr.msra.gmra.mrb[0].mxu0 %v730_v31 }
 0x232   : > { %1894 = vmatprep.mubr.msk.bf16.mxu0 %vm2482_vm0, %v2481_v3  ;;  %1879 = vmatpush3.bf16.msra.mxu0 %v2115_v34  ;;  %p2390_p0 = pneg %p2389_p13 }
 0x233   : > { %1880 = vmatprep.subr.bf16.mxu0 %v2481_v3 }
 0x236   : > { %1881 = vmatpush3.bf16.msra.mxu0 %v2116_v35  ;;  %v2145_v35 = vld [vmem:[#allocation13 + $0x30] sm:$0xff]  }
 0x237   : > { %1882 = vmatprep.subr.bf16.mxu0 %v2481_v3 }
 0x23a   : > { %1883 = vmatpush3.bf16.msra.mxu0 %v2117_v36  ;;  %v2146_v36 = vld [vmem:[#allocation13 + $0x38] sm:$0xff]  }
 0x23b   : > { %1884 = vmatprep.subr.bf16.mxu0 %v2481_v3 }
 0x23e   : > { %1885 = vmatpush3.bf16.msra.mxu0 %v2118_v37  ;;  %v2147_v37 = vld [vmem:[#allocation14] sm:$0xff]  }
 0x23f   : > { %1886 = vmatprep.subr.bf16.mxu0 %v2481_v3 }
 0x242   : > { %1887 = vmatpush3.bf16.msra.mxu0 %v2119_v38  ;;  %v2148_v38 = vld [vmem:[#allocation14 + $0x8] sm:$0xff]  }
 0x243   : > { %1888 = vmatprep.subr.bf16.mxu0 %v2481_v3 }
 0x246   : > { %1889 = vmatpush3.bf16.msra.mxu0 %v2120_v39  ;;  %v2149_v39 = vld [vmem:[#allocation14 + $0x10] sm:$0xff]  }
 0x247   : > { %1890 = vmatprep.subr.bf16.mxu0 %v2481_v3 }
 0x24a   : > { %1891 = vmatpush3.bf16.msra.mxu0 %v2121_v48 }
 0x24b   : > { %1892 = vmatprep.subr.bf16.mxu0 %v2481_v3 }
 0x24e   : > { %1893 = vmatpush3.bf16.msra.mxu0 %v2122_v49 }
 0x24f   : > { %1918 = vmatprep.subr.bf16.mxu0 %v2481_v3 }
 0x304   : > { %v836_v41 = vpop.f32.mrb[0].mxu0 }
 0x305   : > { %v837_v42 = vadd.f32 %v1707_v40, %v836_v41  ;;  %v1856_v43 = vpop.f32.mrb[1].mxu0  ;;  %v2150_v40 = vld [vmem:[#allocation14 + $0x18] sm:$0xff]   ;;  %v2151_v41 = vld [vmem:[#allocation14 + $0x20] sm:$0xff]  }
 0x306   : > { %v839_v44 = vpop.f32.mrb[2].mxu0  ;;  %v1743_v43 = vld [vmem:[%s3106_s17] ss:$0 sm:$0xff] }
 0x307   : > { %v842_v45 = vmax.f32 %v837_v42, 0.0  ;;  %v1857_v46 = vpop.f32.mrb[3].mxu0  ;;  %v2152_v42 = vld [vmem:[#allocation14 + $0x28] sm:$0xff]  }
 0x309   : > { %v843_v47 = vpack.c.bf16 %v842_v45, %v842_v45 }
 0x30b   : > { %1875 = vmatmul.mubr.bf16.vlgmr.msra.gmra.mrb[0].mxu1 %v843_v47 }
 0x30c   : > { %1914 = vmatprep.mubr.msk.bf16.mxu1 %vm2482_vm0, %v2481_v3  ;;  %1899 = vmatpush3.bf16.msra.mxu1 %v2123_v50 }
 0x30d   : > { %1900 = vmatprep.subr.bf16.mxu1 %v2481_v3 }
 0x310   : > { %1901 = vmatpush3.bf16.msra.mxu1 %v2124_v51  ;;  %v2153_v51 = vld [vmem:[#allocation14 + $0x30] sm:$0xff]  }
 0x311   : > { %1902 = vmatprep.subr.bf16.mxu1 %v2481_v3 }
 0x314   : > { %1903 = vmatpush3.bf16.msra.mxu1 %v2125_v52  ;;  %v2154_v52 = vld [vmem:[#allocation14 + $0x38] sm:$0xff]  }
 0x315   : > { %1904 = vmatprep.subr.bf16.mxu1 %v2481_v3 }
 0x318   : > { %1905 = vmatpush3.bf16.msra.mxu1 %v2126_v53  ;;  %v1752_v53 = vld [vmem:[%s3107_s20] ss:$0 sm:$0xff]  ;;  %s1532_s20 = scalar_lea.sflag [#allocation4], %s2864_s4 }
 0x319   : > { %1906 = vmatprep.subr.bf16.mxu1 %v2481_v3 }
 0x31c   : > { %1907 = vmatpush3.bf16.msra.mxu1 %v2127_v54 }
 0x31d   : > { %1908 = vmatprep.subr.bf16.mxu1 %v2481_v3 }
 0x320   : > { %1909 = vmatpush3.bf16.msra.mxu1 %v2128_v55 }
 0x321   : > { %1910 = vmatprep.subr.bf16.mxu1 %v2481_v3 }
 0x324   : > { %1911 = vmatpush3.bf16.msra.mxu1 %v2129_v1 }
 0x325   : > { %1912 = vmatprep.subr.bf16.mxu1 %v2481_v3 }
 0x328   : > { %1913 = vmatpush3.bf16.msra.mxu1 %v2130_v2 }
 0x329   : > { %1938 = vmatprep.subr.bf16.mxu1 %v2481_v3 }
 0x3de   : > { %v949_v57 = vpop.f32.mrb[0].mxu1 }
 0x3df   : > { %v950_v58 = vadd.f32 %v1716_v56, %v949_v57  ;;  %v1876_v59 = vpop.f32.mrb[1].mxu1 }
 0x3e0   : > { %v952_v60 = vpop.f32.mrb[2].mxu1 }
 0x3e1   : > { %v955_v61 = vmax.f32 %v950_v58, 0.0  ;;  %v1877_v62 = vpop.f32.mrb[3].mxu1 }
 0x3e3   : > { %v2948_v63 = vadd.f32 %v955_v61, %v2917_v30 }
 0x3e5   : > { %v957_v0 = vpack.c.bf16 %v2948_v63, %v2948_v63 }
 0x3e7   : > { %1895 = vmatmul.mubr.bf16.vlgmr.msra.gmra.mrb[4].mxu0 %v957_v0 }
 0x3e8   : > { %1934 = vmatprep.mubr.msk.bf16.mxu0 %vm2482_vm0, %v2481_v3  ;;  %1919 = vmatpush3.bf16.msra.mxu0 %v2131_v4 }
 0x3e9   : > { %1920 = vmatprep.subr.bf16.mxu0 %v2481_v3 }
 0x3ec   : > { %1921 = vmatpush3.bf16.msra.mxu0 %v2132_v5 }
 0x3ed   : > { %1922 = vmatprep.subr.bf16.mxu0 %v2481_v3 }
 0x3f0   : > { %1923 = vmatpush3.bf16.msra.mxu0 %v2133_v6 }
 0x3f1   : > { %1924 = vmatprep.subr.bf16.mxu0 %v2481_v3 }
 0x3f4   : > { %1925 = vmatpush3.bf16.msra.mxu0 %v2134_v7 }
 0x3f5   : > { %1926 = vmatprep.subr.bf16.mxu0 %v2481_v3 }
 0x3f8   : > { %1927 = vmatpush3.bf16.msra.mxu0 %v2135_v8 }
 0x3f9   : > { %1928 = vmatprep.subr.bf16.mxu0 %v2481_v3 }
 0x3fc   : > { %1929 = vmatpush3.bf16.msra.mxu0 %v2136_v9 }
 0x3fd   : > { %1930 = vmatprep.subr.bf16.mxu0 %v2481_v3 }
 0x400   : > { %1931 = vmatpush3.bf16.msra.mxu0 %v2137_v18 }
 0x401   : > { %1932 = vmatprep.subr.bf16.mxu0 %v2481_v3 }
 0x404   : > { %1933 = vmatpush3.bf16.msra.mxu0 %v2138_v19 }
 0x405   : > { %1958 = vmatprep.subr.bf16.mxu0 %v2481_v3 }
 0x4ba   : > { %v1063_v11 = vpop.f32.mrb[4].mxu0 }
 0x4bb   : > { %v1064_v12 = vadd.f32 %v1725_v10, %v1063_v11  ;;  %v1896_v13 = vpop.f32.mrb[5].mxu0 }
 0x4bc   : > { %v1066_v14 = vpop.f32.mrb[6].mxu0 }
 0x4bd   : > { %v1069_v15 = vmax.f32 %v1064_v12, 0.0  ;;  %v1897_v16 = vpop.f32.mrb[7].mxu0 }
 0x4bf   : > { %v1070_v17 = vpack.c.bf16 %v1069_v15, %v1069_v15 }
 0x4c1   : > { %1915 = vmatmul.mubr.bf16.vlgmr.msra.gmra.mrb[4].mxu1 %v1070_v17 }
 0x4c2   : > { %1954 = vmatprep.mubr.msk.bf16.mxu1 %vm2482_vm0, %v2481_v3  ;;  %1939 = vmatpush3.bf16.msra.mxu1 %v2139_v20 }
 0x4c3   : > { %1940 = vmatprep.subr.bf16.mxu1 %v2481_v3 }
 0x4c6   : > { %1941 = vmatpush3.bf16.msra.mxu1 %v2140_v21 }
 0x4c7   : > { %1942 = vmatprep.subr.bf16.mxu1 %v2481_v3 }
 0x4ca   : > { %1943 = vmatpush3.bf16.msra.mxu1 %v2141_v22 }
 0x4cb   : > { %1944 = vmatprep.subr.bf16.mxu1 %v2481_v3 }
 0x4ce   : > { %1945 = vmatpush3.bf16.msra.mxu1 %v2142_v23 }
 0x4cf   : > { %1946 = vmatprep.subr.bf16.mxu1 %v2481_v3 }
 0x4d2   : > { %1947 = vmatpush3.bf16.msra.mxu1 %v2143_v24 }
 0x4d3   : > { %1948 = vmatprep.subr.bf16.mxu1 %v2481_v3 }
 0x4d6   : > { %1949 = vmatpush3.bf16.msra.mxu1 %v2144_v25 }
 0x4d7   : > { %1950 = vmatprep.subr.bf16.mxu1 %v2481_v3 }
 0x4da   : > { %1951 = vmatpush3.bf16.msra.mxu1 %v2145_v35 }
 0x4db   : > { %1952 = vmatprep.subr.bf16.mxu1 %v2481_v3 }
 0x4de   : > { %1953 = vmatpush3.bf16.msra.mxu1 %v2146_v36 }
 0x594   : > { %v1176_v27 = vpop.f32.mrb[4].mxu1 }
 0x595   : > { %v1177_v28 = vadd.f32 %v1734_v26, %v1176_v27  ;;  %v1916_v29 = vpop.f32.mrb[5].mxu1 }
 0x596   : > { %v1179_v30 = vpop.f32.mrb[6].mxu1 }
 0x597   : > { %v1182_v31 = vmax.f32 %v1177_v28, 0.0  ;;  %v1917_v32 = vpop.f32.mrb[7].mxu1 }
 0x599   : > { %v1183_v33 = vadd.f32 %v1182_v31, %v2948_v63 }
 0x59b   : > { %v1184_v34 = vpack.c.bf16 %v1183_v33, %v1183_v33 }
 0x59d   : > { %1935 = vmatmul.mubr.bf16.vlgmr.msra.gmra.mrb[8].mxu0 %v1184_v34 }
 0x59e   : > { %1974 = vmatprep.mubr.msk.bf16.mxu0 %vm2482_vm0, %v2481_v3  ;;  %1959 = vmatpush3.bf16.msra.mxu0 %v2147_v37 }
 0x59f   : > { %1960 = vmatprep.subr.bf16.mxu0 %v2481_v3 }
 0x5a2   : > { %1961 = vmatpush3.bf16.msra.mxu0 %v2148_v38 }
 0x5a3   : > { %1962 = vmatprep.subr.bf16.mxu0 %v2481_v3 }
 0x5a6   : > { %1963 = vmatpush3.bf16.msra.mxu0 %v2149_v39 }
 0x5a7   : > { %1964 = vmatprep.subr.bf16.mxu0 %v2481_v3 }
 0x5aa   : > { %1965 = vmatpush3.bf16.msra.mxu0 %v2150_v40 }
 0x5ab   : > { %1966 = vmatprep.subr.bf16.mxu0 %v2481_v3 }
 0x5ae   : > { %1967 = vmatpush3.bf16.msra.mxu0 %v2151_v41 }
 0x5af   : > { %1968 = vmatprep.subr.bf16.mxu0 %v2481_v3 }
 0x5b2   : > { %1969 = vmatpush3.bf16.msra.mxu0 %v2152_v42 }
 0x5b3   : > { %1970 = vmatprep.subr.bf16.mxu0 %v2481_v3 }
 0x5b6   : > { %1971 = vmatpush3.bf16.msra.mxu0 %v2153_v51 }
 0x5b7   : > { %1972 = vmatprep.subr.bf16.mxu0 %v2481_v3  ;;  %v1761_v3 = vld [vmem:[%s3108_s25] ss:$0 sm:$0xff]  ;;  %s2393_s25 = scalar_lea.vmem %s2392_s11, 128 }
 0x5b8   : > { %p2395_p3 = scmp.lt.s32.totalorder %s2393_s25, %s2387_s26 }
 0x5ba   : > { %1973 = vmatpush3.bf16.msra.mxu0 %v2154_v52  ;;  %p2396_p6 = por %p2395_p3, %p2394_p2 }
 0x5bc   : > { %p2397_p10 = pnand %p2396_p6, %p2390_p0 }
 0x670   : > { %v1290_v44 = vpop.f32.mrb[8].mxu0 }
 0x671   : > { %v1291_v45 = vadd.f32 %v1743_v43, %v1290_v44  ;;  %v1936_v46 = vpop.f32.mrb[9].mxu0 }
 0x672   : > { %v1293_v47 = vpop.f32.mrb[10].mxu0 }
 0x673   : > { %v1296_v48 = vmax.f32 %v1291_v45, 0.0  ;;  %v1937_v49 = vpop.f32.mrb[11].mxu0 }
 0x675   : > { %v1297_v50 = vpack.c.bf16 %v1296_v48, %v1296_v48 }
 0x677   : > { %1955 = vmatmul.mubr.bf16.vlgmr.msra.gmra.mrb[8].mxu1 %v1297_v50 }
 0x74a   : > { %v1403_v54 = vpop.f32.mrb[8].mxu1 }
 0x74b   : > { %v1404_v55 = vadd.f32 %v1752_v53, %v1403_v54  ;;  %v1956_v56 = vpop.f32.mrb[9].mxu1 }
 0x74c   : > { %v1406_v57 = vpop.f32.mrb[10].mxu1 }
 0x74d   : > { %v1409_v58 = vmax.f32 %v1404_v55, 0.0  ;;  %v1957_v59 = vpop.f32.mrb[11].mxu1 }
 0x74f   : > { %v1410_v60 = vadd.f32 %v1409_v58, %v1183_v33 }
 0x751   : > { %v1411_v61 = vpack.c.bf16 %v1410_v60, %v1410_v60 }
 0x753   : > { %1975 = vmatmul.mubr.bf16.vlgmr.msra.gmra.mrb[12].mxu0 %v1411_v61 }
 0x826   : > { %v1517_v62 = vpop.f32.mrb[12].mxu0 }
 0x827   : > { %v1518_v63 = vadd.f32 %v1761_v3, %v1517_v62  ;;  %v1976_v0 = vpop.f32.mrb[13].mxu0 }
 0x828   : > { %v1520_v1 = vpop.f32.mrb[14].mxu0 }
 0x829   : > { %v1770_v2 = vmul.f32 -1.442695, %v1518_v63  ;;  %v1977_v4 = vpop.f32.mrb[15].mxu0 }
 0x82b   : > { %2157 = vpow2.f32 %v1770_v2 }
 0x835   : > { %v2158_v5 = vpop.eup %2157 }
 0x836   : > { %v1526_v6 = vadd.f32 1.0, %v2158_v5 }
 0x838   : > { %2159 = vrcp.f32 %v1526_v6 }
 0x842   : > { %v2160_v7 = vpop.eup %2159 }
 0x843   : > { %v1529_v8 = vpack.c.bf16 %v2160_v7, %v2160_v7 }
 0x845   : > { %1530 = vst [vmem:[%s692_s23] sm:$0xf] %v1529_v8 }
 0x846   : > { %2400 = shalt.err (!%p2397_p10)
}
 0x847   : > { %s2401_s4 = scalar_lea.hbm %s3003_s15, 64  ;;  %s2405_s23 = scalar_lea.hbm %s3109_s7, 128 }
 0x848   : > { %p2402_p11 = scmp.ne.s32.totalorder %s3003_s15, %s2401_s4  ;;  %p2406_p9 = scmp.lt.u32.totalorder %s3003_s15, %s3109_s7 }
 0x849   : > { %p2407_p7 = scmp.lt.u32.totalorder %s2405_s23, %s2401_s4  ;;  %p2409_p12 = scmp.lt.u32.totalorder %s2401_s4, %s3003_s15 }
 0x84a   : > { %p2403_p8 = pnand %p2402_p11, %p3110_p1 }
 0x84b   : > { %p2408_p4 = por %p2407_p7, %p2406_p9 }
 0x84c   : > { %p2404_p5 = pneg %p2403_p8 }
 0x84d   : > { %p2410_p13 = por %p2409_p12, %p2408_p4 }
 0x84f   : > { %p2411_p0 = pnand %p2410_p13, %p2404_p5 }
 0x851   : > { %2414 = shalt.err (!%p2411_p0)
}
 0x852   : > { %2008 = dma.vmem_to_hbm [thread:$0]  (%p3110_p1), %s3005_s0, 64, %s3003_s15, %s1532_s20  }
 0x853 PF: > { %s1557_s26 = sand.u32 1, %s2457_s27   ;;  %p3111_p2 = scmp.ne.s32.totalorder %s3089_s13, 0 }
 0x854   : > { %p3112_p3 = scmp.ge.s32.totalorder %s2469_s30, 2  ;;  %s1558_s1 = scalar_lea.sflag [#allocation4], %s1557_s26 }
 0x856   : > { %p2037_p6 = pnand %p3112_p3, %p3111_p2 }
 0x858   : > { %2452 = dma.done.wait (!%p2037_p6), %s1558_s1, 64  }
 0x859   : > { %2454 = vsyncadd (!%p2037_p6), %s1558_s1, 4294967232  ;;  %p35_p10 = scmp.ge.s32.totalorder %s2794_s21, 4   ;;  %s3113_s27 = smov %s2461_s28 }
 0x85a   : > { %s3114_s28 = smov %s2465_s29  ;;  %s3115_s29 = smov %s2806_s9 }
 0x85b   : > { %s3116_s30 = smov %s2794_s21  ;;  %37 = sbr.rel (!%p35_p10) target bundleno = 21 (0x15), region = 165 }
 0x862   :  { %1563 = vsyncpa [#allocation3], 1 }
 0x863   :  { %1565 = vsyncpa [#allocation3 + $0x1], 1 }
 0x864   :  { %1566 = vsyncpa [#allocation6], 1 }
 0x865   :  { %1567 = vsyncpa [#allocation9], 1 }
 0x866   :  { %1568 = vsyncpa [#allocation12], 1 }
 0x867   :  { %1569 = vsyncpa [#allocation15], 1 }
 0x868   :  { %1570 = vsyncpa [#allocation4], 1 }
 0x869   :  { %1572 = vsyncpa [#allocation4 + $0x1], 1 }

</bundles_post_ra>
